<compile_context>
chip_gen: v7x
topology: tpu7x:2x2x1
jax: 0.10.0
libtpu: 0.0.40
codegen_flags: <defaults>
</compile_context>

<pallas_src>
import functools

import jax
import jax.numpy as jnp
from jax import lax
from jax.experimental import pallas as pl
from jax.experimental.pallas import tpu as pltpu

# Explicit scoped-VMEM budget.  Per grid step the conv kernel holds roughly
# 2x(padded bf16 image block) + 2x(bf16 row-tile output) + weights + f32
# scratch; at real YOLO head sizes (e.g. 52x52x256 -> 512) that is a few MiB,
# comfortably under this cap on v5e (16 MiB default scoped), v6e (32 MiB) and
# v7x (64 MiB physical).  Shrink row_tile if channel counts grow further.
_VMEM_LIMIT_BYTES = 32 * 1024 * 1024


# --------------------- kernel 1: 3x3 conv + BN partial stats -------------------
def _conv3x3_stats_kernel(xpad_ref, w_ref, y_ref, stat_ref, acc_ref):
    """One (batch, row-tile) grid step.

    xpad_ref : (Hp, Wp, Ci)   bf16  whole padded image of batch b (block index
                                    constant in t -> fetched once per b)
    w_ref    : (3, 3, Ci, Co) bf16  HWIO weights (resident)
    y_ref    : (TH, W, Co)    bf16  conv output rows [t*TH, t*TH + TH)
    stat_ref : (2, Co)        f32   per-block [sum; sum_of_squares] over TH*W
    acc_ref  : (TH*W, Co)     f32   VMEM scratch accumulator
    """
    TH, W, Co = y_ref.shape
    Ci = xpad_ref.shape[-1]
    t = pl.program_id(1)
    row0 = pl.multiple_of(t * TH, TH)

    # TH+2 input rows needed by this output row tile (3x3 conv halo = 2 rows).
    rows = xpad_ref[pl.ds(row0, TH + 2)]                     # (TH+2, Wp, Ci)

    # Build the 3 W-shifted (sublane-shifted) copies once; reuse each across
    # the 3 kh taps so the inner loop only slices the cheap leading row axis.
    shifted = [rows[:, kw:kw + W, :] for kw in range(3)]     # 3 x (TH+2, W, Ci)

    acc_ref[...] = jnp.zeros_like(acc_ref)
    for kw in range(3):
        xs = shifted[kw]
        for kh in range(3):
            patch = xs[kh:kh + TH].reshape(TH * W, Ci)       # leading-axis slice
            acc_ref[...] += jnp.dot(patch, w_ref[kh, kw],
                                    preferred_element_type=jnp.float32)

    acc = acc_ref[...]                                       # f32
    y_ref[...] = acc.reshape(TH, W, Co).astype(y_ref.dtype)  # bf16 intermediate
    # f32 partial BN statistics (combined across blocks in the wrapper).
    stat_ref[0:1, :] = jnp.sum(acc, axis=0, keepdims=True)
    stat_ref[1:2, :] = jnp.sum(acc * acc, axis=0, keepdims=True)


def conv3x3_with_stats(xpad, w1, row_tile):
    N, Hp, Wp, Ci = xpad.shape
    H, W = Hp - 2, Wp - 2
    Co = w1.shape[-1]
    T = H // row_tile
    return pl.pallas_call(
        _conv3x3_stats_kernel,
        out_shape=(
            jax.ShapeDtypeStruct((N, H, W, Co), jnp.bfloat16),   # y1 (bf16)
            jax.ShapeDtypeStruct((N, T, 2, Co), jnp.float32),    # partial stats
        ),
        grid=(N, T),
        in_specs=[
            # Whole padded image per batch element: block index does not depend
            # on t, so Pallas DMAs it once per b (no re-fetch per row tile).
            pl.BlockSpec((None, Hp, Wp, Ci), lambda b, t: (b, 0, 0, 0)),
            pl.BlockSpec((3, 3, Ci, Co), lambda b, t: (0, 0, 0, 0)),
        ],
        out_specs=(
            pl.BlockSpec((None, row_tile, W, Co), lambda b, t: (b, t, 0, 0)),
            pl.BlockSpec((None, None, 2, Co), lambda b, t: (b, t, 0, 0)),
        ),
        scratch_shapes=[pltpu.VMEM((row_tile * W, Co), jnp.float32)],
        compiler_params=pltpu.CompilerParams(
            dimension_semantics=("parallel", "parallel"),
            vmem_limit_bytes=_VMEM_LIMIT_BYTES),
    )(xpad, w1)


# ------------------- kernel 2: BN affine + LeakyReLU + 1x1 conv ----------------
def _bn_leaky_conv1x1_kernel(y_ref, scale_ref, bias_ref, w2_ref, b2_ref, o_ref):
    """y_ref: (TH, W, C1) bf16; scale/bias: (1, C1) f32 folded BN affine;
    w2_ref: (C1, C2p) bf16; b2_ref: (1, C2p) f32; o_ref: (TH, W, C2p) f32
    (C2p = C2 zero-padded to a multiple of 128 -> lane-dense stores)."""
    TH, W, C2p = o_ref.shape
    C1 = y_ref.shape[-1]
    z = y_ref[...].astype(jnp.float32) * scale_ref[...] + bias_ref[...]
    z = jnp.where(z >= 0, z, 0.1 * z)                        # LeakyReLU(0.1)
    out = jnp.dot(z.reshape(TH * W, C1).astype(jnp.bfloat16), w2_ref[...],
                  preferred_element_type=jnp.float32)
    out = out + b2_ref[...]
    o_ref[...] = out.reshape(TH, W, C2p)


def bn_leaky_conv1x1(y1, scale, bias, w2p, b2p, row_tile):
    N, H, W, C1 = y1.shape
    C2p = w2p.shape[-1]
    T = H // row_tile
    return pl.pallas_call(
        _bn_leaky_conv1x1_kernel,
        out_shape=jax.ShapeDtypeStruct((N, H, W, C2p), jnp.float32),
        grid=(N, T),
        in_specs=[
            pl.BlockSpec((None, row_tile, W, C1), lambda b, t: (b, t, 0, 0)),
            pl.BlockSpec((1, C1), lambda b, t: (0, 0)),
            pl.BlockSpec((1, C1), lambda b, t: (0, 0)),
            pl.BlockSpec((C1, C2p), lambda b, t: (0, 0)),
            pl.BlockSpec((1, C2p), lambda b, t: (0, 0)),
        ],
        out_specs=pl.BlockSpec((None, row_tile, W, C2p), lambda b, t: (b, t, 0, 0)),
        compiler_params=pltpu.CompilerParams(
            dimension_semantics=("parallel", "parallel"),
            vmem_limit_bytes=_VMEM_LIMIT_BYTES),
    )(y1, scale, bias, w2p, b2p)


# ------------------------------ full forward pass ------------------------------
def scale_prediction_forward(x_nchw, params, num_classes, row_tile=8):
    """x_nchw: (N, Cin, H, W) f32 -> (N, 3, H, W, num_classes + 5) f32."""
    w1, gamma, beta, w2, b2 = params
    N, Cin, H, W = x_nchw.shape
    C1 = w1.shape[-1]
    C2 = w2.shape[-1]
    if H % row_tile != 0:                     # fallback: whole image per step
        row_tile = H

    # NCHW -> NHWC, zero-pad H/W by 1, cast conv operands to bf16 (one fused
    # producer chain under jit; bf16 halves the input's HBM traffic).
    x = jnp.transpose(x_nchw, (0, 2, 3, 1)).astype(jnp.bfloat16)
    xpad = jnp.pad(x, ((0, 0), (1, 1), (1, 1), (0, 0)))
    w1b = w1.astype(jnp.bfloat16)

    y1, stats = conv3x3_with_stats(xpad, w1b, row_tile)

    # Finalize training-mode BatchNorm statistics (biased variance, eps=1e-5)
    # from the tiny f32 partial sums -- no extra full HBM pass over y1.
    # TODO(synk): running_mean/running_var buffer updates (a PyTorch training
    # side effect) are not emitted; the forward math is unaffected.
    eps = 1e-5
    cnt = jnp.float32(N * H * W)
    total = stats[:, :, 0, :].sum(axis=(0, 1))
    total_sq = stats[:, :, 1, :].sum(axis=(0, 1))
    mean = total / cnt
    var = jnp.maximum(total_sq / cnt - mean * mean, 0.0)
    inv_std = gamma / jnp.sqrt(var + eps)
    scale = inv_std.reshape(1, C1)
    bias = (beta - mean * inv_std).reshape(1, C1)

    # Pad the 1x1-conv output channels to a multiple of 128 (lane-dense vst);
    # the zero padding is sliced off below (fused with the final transpose).
    C2p = ((C2 + 127) // 128) * 128
    w2p = jnp.pad(w2, ((0, 0), (0, C2p - C2))).astype(jnp.bfloat16)
    b2p = jnp.pad(b2, (0, C2p - C2)).reshape(1, C2p)

    out_nhwc = bn_leaky_conv1x1(y1, scale, bias, w2p, b2p, row_tile)

    # PyTorch: NCHW -> reshape(N,3,C+5,H,W) -> permute(0,1,3,4,2); equivalent
    # starting from NHWC:
    out = out_nhwc[..., :C2].reshape(N, H, W, 3, num_classes + 5)
    return jnp.transpose(out, (0, 3, 1, 2, 4))


# ---------------------------- pure-JAX references -------------------------------
def reference_forward(x_nchw, params, num_classes, match_kernel_precision=False):
    """Reference.  With match_kernel_precision=True it mirrors the kernels'
    bf16-operand / f32-accumulation / bf16-y1-storage choices exactly."""
    w1, gamma, beta, w2, b2 = params
    N, Cin, H, W = x_nchw.shape
    cast = (lambda a: a.astype(jnp.bfloat16)) if match_kernel_precision else (lambda a: a)

    y = lax.conv_general_dilated(
        cast(x_nchw), cast(w1), window_strides=(1, 1), padding=((1, 1), (1, 1)),
        dimension_numbers=("NCHW", "HWIO", "NCHW"),
        preferred_element_type=jnp.float32)

    eps = 1e-5
    mean = y.mean(axis=(0, 2, 3), keepdims=True)
    var = ((y - mean) ** 2).mean(axis=(0, 2, 3), keepdims=True)
    scale = gamma.reshape(1, -1, 1, 1) / jnp.sqrt(var + eps)
    bias = beta.reshape(1, -1, 1, 1) - mean * scale

    if match_kernel_precision:          # y1 intermediate stored in bf16
        y = y.astype(jnp.bfloat16).astype(jnp.float32)
    z = y * scale + bias
    z = jnp.where(z >= 0, z, 0.1 * z)

    w2_hwio = w2.reshape(1, 1, *w2.shape)
    out = lax.conv_general_dilated(
        cast(z), cast(w2_hwio), window_strides=(1, 1), padding=((0, 0), (0, 0)),
        dimension_numbers=("NCHW", "HWIO", "NCHW"),
        preferred_element_type=jnp.float32)
    out = out + b2.reshape(1, -1, 1, 1)
    out = out.reshape(N, 3, num_classes + 5, H, W)
    return jnp.transpose(out, (0, 1, 3, 4, 2))


if __name__ == "__main__":
    # Small, module-consistent shapes.
    N, Cin, H, W = 2, 4, 16, 16
    num_classes = 3
    C1 = 2 * Cin                       # CNNBlock 1 output channels
    C2 = 3 * (num_classes + 5)         # CNNBlock 2 output channels

    key = jax.random.PRNGKey(0)
    kx, k1, kg, kb, k2, kb2 = jax.random.split(key, 6)
    x = jax.random.normal(kx, (N, Cin, H, W), jnp.float32)
    w1 = 0.1 * jax.random.normal(k1, (3, 3, Cin, C1), jnp.float32)    # HWIO, no bias
    gamma = 1.0 + 0.1 * jax.random.normal(kg, (C1,), jnp.float32)     # BN weight
    beta = 0.1 * jax.random.normal(kb, (C1,), jnp.float32)            # BN bias
    w2 = 0.1 * jax.random.normal(k2, (C1, C2), jnp.float32)           # 1x1 conv weight
    b2 = 0.1 * jax.random.normal(kb2, (C2,), jnp.float32)             # 1x1 conv bias
    params = (w1, gamma, beta, w2, b2)

    fwd = jax.jit(functools.partial(scale_prediction_forward,
                                    num_classes=num_classes, row_tile=8))
    out = jax.block_until_ready(fwd(x, params))
    assert out.shape == (N, 3, H, W, num_classes + 5), out.shape

    # Tight check against a reference using the same bf16-operand /
    # f32-accumulation arithmetic as the kernels.
    ref_bf16 = reference_forward(x, params, num_classes, match_kernel_precision=True)
    err_bf16 = float(jnp.max(jnp.abs(out - ref_bf16)))
    assert jnp.allclose(out, ref_bf16, rtol=5e-3, atol=5e-3), err_bf16

    # Looser check against the pure-f32 PyTorch-equivalent reference
    # (deviation bounded by bf16 operand rounding).
    ref_f32 = reference_forward(x, params, num_classes, match_kernel_precision=False)
    err_f32 = float(jnp.max(jnp.abs(out - ref_f32)))
    assert jnp.allclose(out, ref_f32, rtol=5e-2, atol=5e-2), err_f32

    print("KERNEL_OK")
</pallas_src>

<mosaic_0001>
module attributes {stable_mosaic.version = 11 : i64} {
  func.func @_conv3x3_stats_kernel(%arg0: i32, %arg1: i32, %arg2: memref<1x18x18x4xbf16, #tpu.memory_space<vmem>>, %arg3: memref<3x3x4x8xbf16, #tpu.memory_space<vmem>>, %arg4: memref<1x8x16x8xbf16, #tpu.memory_space<vmem>>, %arg5: memref<1x1x2x8xf32, #tpu.memory_space<vmem>>, %arg6: memref<128x8xf32, #tpu.memory_space<vmem>>) attributes {dimension_semantics = [#tpu.dimension_semantics<parallel>, #tpu.dimension_semantics<parallel>], iteration_bounds = array<i64: 2, 2>, scalar_prefetch = 0 : i64, scratch_operands = 1 : i64, tpu.core_type = #tpu.core_type<tc>, window_params = [{transform_indices = @transform_0, window_bounds = array<i64: 1, 18, 18, 4>}, {pipeline_mode = #tpu.pipeline_mode<synchronous>, transform_indices = @transform_1, window_bounds = array<i64: 3, 3, 4, 8>}, {transform_indices = @transform_2, window_bounds = array<i64: 1, 8, 16, 8>}, {transform_indices = @transform_3, window_bounds = array<i64: 1, 1, 2, 8>}]} {
    %c8_i32 = arith.constant 8 : i32
    %0 = arith.muli %arg1, %c8_i32 : i32
    %1 = tpu.assume_multiple %0, 8 : i32
    %c0 = arith.constant 0 : index
    %2 = arith.index_cast %1 : i32 to index
    %c0_0 = arith.constant 0 : index
    %c0_1 = arith.constant 0 : index
    %3 = vector.load %arg2[%c0, %2, %c0_0, %c0_1] : memref<1x18x18x4xbf16, #tpu.memory_space<vmem>>, vector<1x10x18x4xbf16>
    %4 = vector.shape_cast %3 : vector<1x10x18x4xbf16> to vector<10x18x4xbf16>
    %5 = vector.extract_strided_slice %4 {offsets = [0, 0, 0], sizes = [10, 16, 4], strides = [1, 1, 1]} : vector<10x18x4xbf16> to vector<10x16x4xbf16>
    %6 = vector.extract_strided_slice %4 {offsets = [0, 1, 0], sizes = [10, 16, 4], strides = [1, 1, 1]} : vector<10x18x4xbf16> to vector<10x16x4xbf16>
    %7 = vector.extract_strided_slice %4 {offsets = [0, 2, 0], sizes = [10, 16, 4], strides = [1, 1, 1]} : vector<10x18x4xbf16> to vector<10x16x4xbf16>
    %cst = arith.constant 0.000000e+00 : f32
    %8 = vector.broadcast %cst : f32 to vector<128x8xf32>
    %c0_2 = arith.constant 0 : index
    %c0_3 = arith.constant 0 : index
    %9 = vector.load %arg6[%c0_2, %c0_3] : memref<128x8xf32, #tpu.memory_space<vmem>>, vector<128x8xf32>
    tpu.vector_store %arg6[%c0_2, %c0_3], %8 {strides = array<i32>} : memref<128x8xf32, #tpu.memory_space<vmem>>, vector<128x8xf32>,
    %10 = vector.extract_strided_slice %5 {offsets = [0, 0, 0], sizes = [8, 16, 4], strides = [1, 1, 1]} : vector<10x16x4xbf16> to vector<8x16x4xbf16>
    %11 = vector.shape_cast %10 : vector<8x16x4xbf16> to vector<128x4xbf16>
    %c0_4 = arith.constant 0 : index
    %c0_5 = arith.constant 0 : index
    %12 = vector.load %arg6[%c0_4, %c0_5] : memref<128x8xf32, #tpu.memory_space<vmem>>, vector<128x8xf32>
    %c0_6 = arith.constant 0 : index
    %c0_7 = arith.constant 0 : index
    %c0_8 = arith.constant 0 : index
    %c0_9 = arith.constant 0 : index
    %13 = vector.load %arg3[%c0_6, %c0_7, %c0_8, %c0_9] : memref<3x3x4x8xbf16, #tpu.memory_space<vmem>>, vector<1x1x4x8xbf16>
    %14 = vector.shape_cast %13 : vector<1x1x4x8xbf16> to vector<4x8xbf16>
    %cst_10 = arith.constant dense<0.000000e+00> : vector<128x8xf32>
    %15 = tpu.matmul %11, %14, %cst_10 {dimension_numbers = #tpu.dot_dimension_numbers<[1], [0], [0], [1], [0, 0, 1, 1], [], []>} : vector<128x4xbf16>, vector<4x8xbf16>, vector<128x8xf32> -> vector<128x8xf32>
    %16 = arith.addf %12, %15 : vector<128x8xf32>
    %c0_11 = arith.constant 0 : index
    %c0_12 = arith.constant 0 : index
    %17 = vector.load %arg6[%c0_11, %c0_12] : memref<128x8xf32, #tpu.memory_space<vmem>>, vector<128x8xf32>
    tpu.vector_store %arg6[%c0_11, %c0_12], %16 {strides = array<i32>} : memref<128x8xf32, #tpu.memory_space<vmem>>, vector<128x8xf32>,
    %18 = vector.extract_strided_slice %5 {offsets = [1, 0, 0], sizes = [8, 16, 4], strides = [1, 1, 1]} : vector<10x16x4xbf16> to vector<8x16x4xbf16>
    %19 = vector.shape_cast %18 : vector<8x16x4xbf16> to vector<128x4xbf16>
    %c0_13 = arith.constant 0 : index
    %c0_14 = arith.constant 0 : index
    %20 = vector.load %arg6[%c0_13, %c0_14] : memref<128x8xf32, #tpu.memory_space<vmem>>, vector<128x8xf32>
    %c1 = arith.constant 1 : index
    %c0_15 = arith.constant 0 : index
    %c0_16 = arith.constant 0 : index
    %c0_17 = arith.constant 0 : index
    %21 = vector.load %arg3[%c1, %c0_15, %c0_16, %c0_17] : memref<3x3x4x8xbf16, #tpu.memory_space<vmem>>, vector<1x1x4x8xbf16>
    %22 = vector.shape_cast %21 : vector<1x1x4x8xbf16> to vector<4x8xbf16>
    %cst_18 = arith.constant dense<0.000000e+00> : vector<128x8xf32>
    %23 = tpu.matmul %19, %22, %cst_18 {dimension_numbers = #tpu.dot_dimension_numbers<[1], [0], [0], [1], [0, 0, 1, 1], [], []>} : vector<128x4xbf16>, vector<4x8xbf16>, vector<128x8xf32> -> vector<128x8xf32>
    %24 = arith.addf %20, %23 : vector<128x8xf32>
    %c0_19 = arith.constant 0 : index
    %c0_20 = arith.constant 0 : index
    %25 = vector.load %arg6[%c0_19, %c0_20] : memref<128x8xf32, #tpu.memory_space<vmem>>, vector<128x8xf32>
    tpu.vector_store %arg6[%c0_19, %c0_20], %24 {strides = array<i32>} : memref<128x8xf32, #tpu.memory_space<vmem>>, vector<128x8xf32>,
    %26 = vector.extract_strided_slice %5 {offsets = [2, 0, 0], sizes = [8, 16, 4], strides = [1, 1, 1]} : vector<10x16x4xbf16> to vector<8x16x4xbf16>
    %27 = vector.shape_cast %26 : vector<8x16x4xbf16> to vector<128x4xbf16>
    %c0_21 = arith.constant 0 : index
    %c0_22 = arith.constant 0 : index
    %28 = vector.load %arg6[%c0_21, %c0_22] : memref<128x8xf32, #tpu.memory_space<vmem>>, vector<128x8xf32>
    %c2 = arith.constant 2 : index
    %c0_23 = arith.constant 0 : index
    %c0_24 = arith.constant 0 : index
    %c0_25 = arith.constant 0 : index
    %29 = vector.load %arg3[%c2, %c0_23, %c0_24, %c0_25] : memref<3x3x4x8xbf16, #tpu.memory_space<vmem>>, vector<1x1x4x8xbf16>
    %30 = vector.shape_cast %29 : vector<1x1x4x8xbf16> to vector<4x8xbf16>
    %cst_26 = arith.constant dense<0.000000e+00> : vector<128x8xf32>
    %31 = tpu.matmul %27, %30, %cst_26 {dimension_numbers = #tpu.dot_dimension_numbers<[1], [0], [0], [1], [0, 0, 1, 1], [], []>} : vector<128x4xbf16>, vector<4x8xbf16>, vector<128x8xf32> -> vector<128x8xf32>
    %32 = arith.addf %28, %31 : vector<128x8xf32>
    %c0_27 = arith.constant 0 : index
    %c0_28 = arith.constant 0 : index
    %33 = vector.load %arg6[%c0_27, %c0_28] : memref<128x8xf32, #tpu.memory_space<vmem>>, vector<128x8xf32>
    tpu.vector_store %arg6[%c0_27, %c0_28], %32 {strides = array<i32>} : memref<128x8xf32, #tpu.memory_space<vmem>>, vector<128x8xf32>,
    %34 = vector.extract_strided_slice %6 {offsets = [0, 0, 0], sizes = [8, 16, 4], strides = [1, 1, 1]} : vector<10x16x4xbf16> to vector<8x16x4xbf16>
    %35 = vector.shape_cast %34 : vector<8x16x4xbf16> to vector<128x4xbf16>
    %c0_29 = arith.constant 0 : index
    %c0_30 = arith.constant 0 : index
    %36 = vector.load %arg6[%c0_29, %c0_30] : memref<128x8xf32, #tpu.memory_space<vmem>>, vector<128x8xf32>
    %c0_31 = arith.constant 0 : index
    %c1_32 = arith.constant 1 : index
    %c0_33 = arith.constant 0 : index
    %c0_34 = arith.constant 0 : index
    %37 = vector.load %arg3[%c0_31, %c1_32, %c0_33, %c0_34] : memref<3x3x4x8xbf16, #tpu.memory_space<vmem>>, vector<1x1x4x8xbf16>
    %38 = vector.shape_cast %37 : vector<1x1x4x8xbf16> to vector<4x8xbf16>
    %cst_35 = arith.constant dense<0.000000e+00> : vector<128x8xf32>
    %39 = tpu.matmul %35, %38, %cst_35 {dimension_numbers = #tpu.dot_dimension_numbers<[1], [0], [0], [1], [0, 0, 1, 1], [], []>} : vector<128x4xbf16>, vector<4x8xbf16>, vector<128x8xf32> -> vector<128x8xf32>
    %40 = arith.addf %36, %39 : vector<128x8xf32>
    %c0_36 = arith.constant 0 : index
    %c0_37 = arith.constant 0 : index
    %41 = vector.load %arg6[%c0_36, %c0_37] : memref<128x8xf32, #tpu.memory_space<vmem>>, vector<128x8xf32>
    tpu.vector_store %arg6[%c0_36, %c0_37], %40 {strides = array<i32>} : memref<128x8xf32, #tpu.memory_space<vmem>>, vector<128x8xf32>,
    %42 = vector.extract_strided_slice %6 {offsets = [1, 0, 0], sizes = [8, 16, 4], strides = [1, 1, 1]} : vector<10x16x4xbf16> to vector<8x16x4xbf16>
    %43 = vector.shape_cast %42 : vector<8x16x4xbf16> to vector<128x4xbf16>
    %c0_38 = arith.constant 0 : index
    %c0_39 = arith.constant 0 : index
    %44 = vector.load %arg6[%c0_38, %c0_39] : memref<128x8xf32, #tpu.memory_space<vmem>>, vector<128x8xf32>
    %c1_40 = arith.constant 1 : index
    %c1_41 = arith.constant 1 : index
    %c0_42 = arith.constant 0 : index
    %c0_43 = arith.constant 0 : index
    %45 = vector.load %arg3[%c1_40, %c1_41, %c0_42, %c0_43] : memref<3x3x4x8xbf16, #tpu.memory_space<vmem>>, vector<1x1x4x8xbf16>
    %46 = vector.shape_cast %45 : vector<1x1x4x8xbf16> to vector<4x8xbf16>
    %cst_44 = arith.constant dense<0.000000e+00> : vector<128x8xf32>
    %47 = tpu.matmul %43, %46, %cst_44 {dimension_numbers = #tpu.dot_dimension_numbers<[1], [0], [0], [1], [0, 0, 1, 1], [], []>} : vector<128x4xbf16>, vector<4x8xbf16>, vector<128x8xf32> -> vector<128x8xf32>
    %48 = arith.addf %44, %47 : vector<128x8xf32>
    %c0_45 = arith.constant 0 : index
    %c0_46 = arith.constant 0 : index
    %49 = vector.load %arg6[%c0_45, %c0_46] : memref<128x8xf32, #tpu.memory_space<vmem>>, vector<128x8xf32>
    tpu.vector_store %arg6[%c0_45, %c0_46], %48 {strides = array<i32>} : memref<128x8xf32, #tpu.memory_space<vmem>>, vector<128x8xf32>,
    %50 = vector.extract_strided_slice %6 {offsets = [2, 0, 0], sizes = [8, 16, 4], strides = [1, 1, 1]} : vector<10x16x4xbf16> to vector<8x16x4xbf16>
    %51 = vector.shape_cast %50 : vector<8x16x4xbf16> to vector<128x4xbf16>
    %c0_47 = arith.constant 0 : index
    %c0_48 = arith.constant 0 : index
    %52 = vector.load %arg6[%c0_47, %c0_48] : memref<128x8xf32, #tpu.memory_space<vmem>>, vector<128x8xf32>
    %c2_49 = arith.constant 2 : index
    %c1_50 = arith.constant 1 : index
    %c0_51 = arith.constant 0 : index
    %c0_52 = arith.constant 0 : index
    %53 = vector.load %arg3[%c2_49, %c1_50, %c0_51, %c0_52] : memref<3x3x4x8xbf16, #tpu.memory_space<vmem>>, vector<1x1x4x8xbf16>
    %54 = vector.shape_cast %53 : vector<1x1x4x8xbf16> to vector<4x8xbf16>
    %cst_53 = arith.constant dense<0.000000e+00> : vector<128x8xf32>
    %55 = tpu.matmul %51, %54, %cst_53 {dimension_numbers = #tpu.dot_dimension_numbers<[1], [0], [0], [1], [0, 0, 1, 1], [], []>} : vector<128x4xbf16>, vector<4x8xbf16>, vector<128x8xf32> -> vector<128x8xf32>
    %56 = arith.addf %52, %55 : vector<128x8xf32>
    %c0_54 = arith.constant 0 : index
    %c0_55 = arith.constant 0 : index
    %57 = vector.load %arg6[%c0_54, %c0_55] : memref<128x8xf32, #tpu.memory_space<vmem>>, vector<128x8xf32>
    tpu.vector_store %arg6[%c0_54, %c0_55], %56 {strides = array<i32>} : memref<128x8xf32, #tpu.memory_space<vmem>>, vector<128x8xf32>,
    %58 = vector.extract_strided_slice %7 {offsets = [0, 0, 0], sizes = [8, 16, 4], strides = [1, 1, 1]} : vector<10x16x4xbf16> to vector<8x16x4xbf16>
    %59 = vector.shape_cast %58 : vector<8x16x4xbf16> to vector<128x4xbf16>
    %c0_56 = arith.constant 0 : index
    %c0_57 = arith.constant 0 : index
    %60 = vector.load %arg6[%c0_56, %c0_57] : memref<128x8xf32, #tpu.memory_space<vmem>>, vector<128x8xf32>
    %c0_58 = arith.constant 0 : index
    %c2_59 = arith.constant 2 : index
    %c0_60 = arith.constant 0 : index
    %c0_61 = arith.constant 0 : index
    %61 = vector.load %arg3[%c0_58, %c2_59, %c0_60, %c0_61] : memref<3x3x4x8xbf16, #tpu.memory_space<vmem>>, vector<1x1x4x8xbf16>
    %62 = vector.shape_cast %61 : vector<1x1x4x8xbf16> to vector<4x8xbf16>
    %cst_62 = arith.constant dense<0.000000e+00> : vector<128x8xf32>
    %63 = tpu.matmul %59, %62, %cst_62 {dimension_numbers = #tpu.dot_dimension_numbers<[1], [0], [0], [1], [0, 0, 1, 1], [], []>} : vector<128x4xbf16>, vector<4x8xbf16>, vector<128x8xf32> -> vector<128x8xf32>
    %64 = arith.addf %60, %63 : vector<128x8xf32>
    %c0_63 = arith.constant 0 : index
    %c0_64 = arith.constant 0 : index
    %65 = vector.load %arg6[%c0_63, %c0_64] : memref<128x8xf32, #tpu.memory_space<vmem>>, vector<128x8xf32>
    tpu.vector_store %arg6[%c0_63, %c0_64], %64 {strides = array<i32>} : memref<128x8xf32, #tpu.memory_space<vmem>>, vector<128x8xf32>,
    %66 = vector.extract_strided_slice %7 {offsets = [1, 0, 0], sizes = [8, 16, 4], strides = [1, 1, 1]} : vector<10x16x4xbf16> to vector<8x16x4xbf16>
    %67 = vector.shape_cast %66 : vector<8x16x4xbf16> to vector<128x4xbf16>
    %c0_65 = arith.constant 0 : index
    %c0_66 = arith.constant 0 : index
    %68 = vector.load %arg6[%c0_65, %c0_66] : memref<128x8xf32, #tpu.memory_space<vmem>>, vector<128x8xf32>
    %c1_67 = arith.constant 1 : index
    %c2_68 = arith.constant 2 : index
    %c0_69 = arith.constant 0 : index
    %c0_70 = arith.constant 0 : index
    %69 = vector.load %arg3[%c1_67, %c2_68, %c0_69, %c0_70] : memref<3x3x4x8xbf16, #tpu.memory_space<vmem>>, vector<1x1x4x8xbf16>
    %70 = vector.shape_cast %69 : vector<1x1x4x8xbf16> to vector<4x8xbf16>
    %cst_71 = arith.constant dense<0.000000e+00> : vector<128x8xf32>
    %71 = tpu.matmul %67, %70, %cst_71 {dimension_numbers = #tpu.dot_dimension_numbers<[1], [0], [0], [1], [0, 0, 1, 1], [], []>} : vector<128x4xbf16>, vector<4x8xbf16>, vector<128x8xf32> -> vector<128x8xf32>
    %72 = arith.addf %68, %71 : vector<128x8xf32>
    %c0_72 = arith.constant 0 : index
    %c0_73 = arith.constant 0 : index
    %73 = vector.load %arg6[%c0_72, %c0_73] : memref<128x8xf32, #tpu.memory_space<vmem>>, vector<128x8xf32>
    tpu.vector_store %arg6[%c0_72, %c0_73], %72 {strides = array<i32>} : memref<128x8xf32, #tpu.memory_space<vmem>>, vector<128x8xf32>,
    %74 = vector.extract_strided_slice %7 {offsets = [2, 0, 0], sizes = [8, 16, 4], strides = [1, 1, 1]} : vector<10x16x4xbf16> to vector<8x16x4xbf16>
    %75 = vector.shape_cast %74 : vector<8x16x4xbf16> to vector<128x4xbf16>
    %c0_74 = arith.constant 0 : index
    %c0_75 = arith.constant 0 : index
    %76 = vector.load %arg6[%c0_74, %c0_75] : memref<128x8xf32, #tpu.memory_space<vmem>>, vector<128x8xf32>
    %c2_76 = arith.constant 2 : index
    %c2_77 = arith.constant 2 : index
    %c0_78 = arith.constant 0 : index
    %c0_79 = arith.constant 0 : index
    %77 = vector.load %arg3[%c2_76, %c2_77, %c0_78, %c0_79] : memref<3x3x4x8xbf16, #tpu.memory_space<vmem>>, vector<1x1x4x8xbf16>
    %78 = vector.shape_cast %77 : vector<1x1x4x8xbf16> to vector<4x8xbf16>
    %cst_80 = arith.constant dense<0.000000e+00> : vector<128x8xf32>
    %79 = tpu.matmul %75, %78, %cst_80 {dimension_numbers = #tpu.dot_dimension_numbers<[1], [0], [0], [1], [0, 0, 1, 1], [], []>} : vector<128x4xbf16>, vector<4x8xbf16>, vector<128x8xf32> -> vector<128x8xf32>
    %80 = arith.addf %76, %79 : vector<128x8xf32>
    %c0_81 = arith.constant 0 : index
    %c0_82 = arith.constant 0 : index
    %81 = vector.load %arg6[%c0_81, %c0_82] : memref<128x8xf32, #tpu.memory_space<vmem>>, vector<128x8xf32>
    tpu.vector_store %arg6[%c0_81, %c0_82], %80 {strides = array<i32>} : memref<128x8xf32, #tpu.memory_space<vmem>>, vector<128x8xf32>,
    %c0_83 = arith.constant 0 : index
    %c0_84 = arith.constant 0 : index
    %82 = vector.load %arg6[%c0_83, %c0_84] : memref<128x8xf32, #tpu.memory_space<vmem>>, vector<128x8xf32>
    %83 = vector.shape_cast %82 : vector<128x8xf32> to vector<8x16x8xf32>
    %84 = arith.truncf %83 : vector<8x16x8xf32> to vector<8x16x8xbf16>
    %c0_85 = arith.constant 0 : index
    %c0_86 = arith.constant 0 : index
    %c0_87 = arith.constant 0 : index
    %c0_88 = arith.constant 0 : index
    %85 = vector.load %arg4[%c0_85, %c0_86, %c0_87, %c0_88] : memref<1x8x16x8xbf16, #tpu.memory_space<vmem>>, vector<1x8x16x8xbf16>
    %86 = vector.shape_cast %85 : vector<1x8x16x8xbf16> to vector<8x16x8xbf16>
    %87 = vector.shape_cast %84 : vector<8x16x8xbf16> to vector<1x8x16x8xbf16>
    tpu.vector_store %arg4[%c0_85, %c0_86, %c0_87, %c0_88], %87 {strides = array<i32>} : memref<1x8x16x8xbf16, #tpu.memory_space<vmem>>, vector<1x8x16x8xbf16>,
    %cst_89 = arith.constant dense<0.000000e+00> : vector<8xf32>
    %88 = vector.multi_reduction <add>, %82, %cst_89 [0] : vector<128x8xf32> to vector<8xf32>
    %89 = vector.shape_cast %88 : vector<8xf32> to vector<1x8xf32>
    %c0_90 = arith.constant 0 : index
    %c0_91 = arith.constant 0 : index
    %c0_92 = arith.constant 0 : index
    %c0_93 = arith.constant 0 : index
    %90 = vector.load %arg5[%c0_90, %c0_91, %c0_92, %c0_93] : memref<1x1x2x8xf32, #tpu.memory_space<vmem>>, vector<1x1x1x8xf32>
    %91 = vector.shape_cast %90 : vector<1x1x1x8xf32> to vector<1x8xf32>
    %92 = vector.shape_cast %89 : vector<1x8xf32> to vector<1x1x1x8xf32>
    tpu.vector_store %arg5[%c0_90, %c0_91, %c0_92, %c0_93], %92 {strides = array<i32>} : memref<1x1x2x8xf32, #tpu.memory_space<vmem>>, vector<1x1x1x8xf32>,
    %93 = arith.mulf %82, %82 : vector<128x8xf32>
    %cst_94 = arith.constant dense<0.000000e+00> : vector<8xf32>
    %94 = vector.multi_reduction <add>, %93, %cst_94 [0] : vector<128x8xf32> to vector<8xf32>
    %95 = vector.shape_cast %94 : vector<8xf32> to vector<1x8xf32>
    %c0_95 = arith.constant 0 : index
    %c0_96 = arith.constant 0 : index
    %c1_97 = arith.constant 1 : index
    %c0_98 = arith.constant 0 : index
    %96 = vector.load %arg5[%c0_95, %c0_96, %c1_97, %c0_98] : memref<1x1x2x8xf32, #tpu.memory_space<vmem>>, vector<1x1x1x8xf32>
    %97 = vector.shape_cast %96 : vector<1x1x1x8xf32> to vector<1x8xf32>
    %98 = vector.shape_cast %95 : vector<1x8xf32> to vector<1x1x1x8xf32>
    tpu.vector_store %arg5[%c0_95, %c0_96, %c1_97, %c0_98], %98 {strides = array<i32>} : memref<1x1x2x8xf32, #tpu.memory_space<vmem>>, vector<1x1x1x8xf32>,
    return
  }
  func.func @transform_0(%arg0: i32, %arg1: i32) -> (i32, i32, i32, i32) {
    %c0_i32 = arith.constant 0 : i32
    %c0_i32_0 = arith.constant 0 : i32
    %c0_i32_1 = arith.constant 0 : i32
    %c0_i32_2 = arith.constant 0 : i32
    return %arg0, %c0_i32, %c0_i32_0, %c0_i32_1 : i32, i32, i32, i32
  }
  func.func @transform_1(%arg0: i32, %arg1: i32) -> (i32, i32, i32, i32) {
    %c0_i32 = arith.constant 0 : i32
    %c0_i32_0 = arith.constant 0 : i32
    %c0_i32_1 = arith.constant 0 : i32
    %c0_i32_2 = arith.constant 0 : i32
    %c0_i32_3 = arith.constant 0 : i32
    return %c0_i32, %c0_i32_0, %c0_i32_1, %c0_i32_2 : i32, i32, i32, i32
  }
  func.func @transform_2(%arg0: i32, %arg1: i32) -> (i32, i32, i32, i32) {
    %c0_i32 = arith.constant 0 : i32
    %c0_i32_0 = arith.constant 0 : i32
    %c0_i32_1 = arith.constant 0 : i32
    return %arg0, %arg1, %c0_i32, %c0_i32_0 : i32, i32, i32, i32
  }
  func.func @transform_3(%arg0: i32, %arg1: i32) -> (i32, i32, i32, i32) {
    %c0_i32 = arith.constant 0 : i32
    %c0_i32_0 = arith.constant 0 : i32
    %c0_i32_1 = arith.constant 0 : i32
    return %arg0, %arg1, %c0_i32, %c0_i32_0 : i32, i32, i32, i32
  }
}

module attributes {stable_mosaic.version = 11 : i64} {
  func.func @_bn_leaky_conv1x1_kernel(%arg0: i32, %arg1: i32, %arg2: memref<1x8x16x8xbf16, #tpu.memory_space<vmem>>, %arg3: memref<1x8xf32, #tpu.memory_space<vmem>>, %arg4: memref<1x8xf32, #tpu.memory_space<vmem>>, %arg5: memref<8x128xbf16, #tpu.memory_space<vmem>>, %arg6: memref<1x128xf32, #tpu.memory_space<vmem>>, %arg7: memref<1x8x16x128xf32, #tpu.memory_space<vmem>>) attributes {dimension_semantics = [#tpu.dimension_semantics<parallel>, #tpu.dimension_semantics<parallel>], iteration_bounds = array<i64: 2, 2>, scalar_prefetch = 0 : i64, scratch_operands = 0 : i64, tpu.core_type = #tpu.core_type<tc>, window_params = [{transform_indices = @transform_0, window_bounds = array<i64: 1, 8, 16, 8>}, {pipeline_mode = #tpu.pipeline_mode<synchronous>, transform_indices = @transform_1, window_bounds = array<i64: 1, 8>}, {pipeline_mode = #tpu.pipeline_mode<synchronous>, transform_indices = @transform_2, window_bounds = array<i64: 1, 8>}, {pipeline_mode = #tpu.pipeline_mode<synchronous>, transform_indices = @transform_3, window_bounds = array<i64: 8, 128>}, {pipeline_mode = #tpu.pipeline_mode<synchronous>, transform_indices = @transform_4, window_bounds = array<i64: 1, 128>}, {transform_indices = @transform_5, window_bounds = array<i64: 1, 8, 16, 128>}]} {
    %c0 = arith.constant 0 : index
    %c0_0 = arith.constant 0 : index
    %c0_1 = arith.constant 0 : index
    %c0_2 = arith.constant 0 : index
    %0 = vector.load %arg2[%c0, %c0_0, %c0_1, %c0_2] : memref<1x8x16x8xbf16, #tpu.memory_space<vmem>>, vector<1x8x16x8xbf16>
    %1 = vector.shape_cast %0 : vector<1x8x16x8xbf16> to vector<8x16x8xbf16>
    %2 = arith.extf %1 : vector<8x16x8xbf16> to vector<8x16x8xf32>
    %c0_3 = arith.constant 0 : index
    %c0_4 = arith.constant 0 : index
    %3 = vector.load %arg3[%c0_3, %c0_4] : memref<1x8xf32, #tpu.memory_space<vmem>>, vector<1x8xf32>
    %4 = vector.shape_cast %3 : vector<1x8xf32> to vector<1x1x8xf32>
    %5 = vector.broadcast %4 : vector<1x1x8xf32> to vector<8x16x8xf32>
    %6 = arith.mulf %2, %5 : vector<8x16x8xf32>
    %c0_5 = arith.constant 0 : index
    %c0_6 = arith.constant 0 : index
    %7 = vector.load %arg4[%c0_5, %c0_6] : memref<1x8xf32, #tpu.memory_space<vmem>>, vector<1x8xf32>
    %8 = vector.shape_cast %7 : vector<1x8xf32> to vector<1x1x8xf32>
    %9 = vector.broadcast %8 : vector<1x1x8xf32> to vector<8x16x8xf32>
    %10 = arith.addf %6, %9 : vector<8x16x8xf32>
    %cst = arith.constant 0.000000e+00 : f32
    %11 = vector.broadcast %cst : f32 to vector<8x16x8xf32>
    %12 = arith.cmpf oge, %10, %11 : vector<8x16x8xf32>
    %cst_7 = arith.constant 1.000000e-01 : f32
    %13 = vector.broadcast %cst_7 : f32 to vector<8x16x8xf32>
    %14 = arith.mulf %13, %10 : vector<8x16x8xf32>
    %15 = arith.select %12, %10, %14 : vector<8x16x8xi1>, vector<8x16x8xf32>
    %16 = vector.shape_cast %15 : vector<8x16x8xf32> to vector<128x8xf32>
    %17 = arith.truncf %16 : vector<128x8xf32> to vector<128x8xbf16>
    %c0_8 = arith.constant 0 : index
    %c0_9 = arith.constant 0 : index
    %18 = vector.load %arg5[%c0_8, %c0_9] : memref<8x128xbf16, #tpu.memory_space<vmem>>, vector<8x128xbf16>
    %cst_10 = arith.constant dense<0.000000e+00> : vector<128x128xf32>
    %19 = tpu.matmul %17, %18, %cst_10 {dimension_numbers = #tpu.dot_dimension_numbers<[1], [0], [0], [1], [0, 0, 1, 1], [], []>} : vector<128x8xbf16>, vector<8x128xbf16>, vector<128x128xf32> -> vector<128x128xf32>
    %c0_11 = arith.constant 0 : index
    %c0_12 = arith.constant 0 : index
    %20 = vector.load %arg6[%c0_11, %c0_12] : memref<1x128xf32, #tpu.memory_space<vmem>>, vector<1x128xf32>
    %21 = vector.broadcast %20 : vector<1x128xf32> to vector<128x128xf32>
    %22 = arith.addf %19, %21 : vector<128x128xf32>
    %23 = vector.shape_cast %22 : vector<128x128xf32> to vector<8x16x128xf32>
    %c0_13 = arith.constant 0 : index
    %c0_14 = arith.constant 0 : index
    %c0_15 = arith.constant 0 : index
    %c0_16 = arith.constant 0 : index
    %24 = vector.load %arg7[%c0_13, %c0_14, %c0_15, %c0_16] : memref<1x8x16x128xf32, #tpu.memory_space<vmem>>, vector<1x8x16x128xf32>
    %25 = vector.shape_cast %24 : vector<1x8x16x128xf32> to vector<8x16x128xf32>
    %26 = vector.shape_cast %23 : vector<8x16x128xf32> to vector<1x8x16x128xf32>
    tpu.vector_store %arg7[%c0_13, %c0_14, %c0_15, %c0_16], %26 {strides = array<i32>} : memref<1x8x16x128xf32, #tpu.memory_space<vmem>>, vector<1x8x16x128xf32>,
    return
  }
  func.func @transform_0(%arg0: i32, %arg1: i32) -> (i32, i32, i32, i32) {
    %c0_i32 = arith.constant 0 : i32
    %c0_i32_0 = arith.constant 0 : i32
    %c0_i32_1 = arith.constant 0 : i32
    return %arg0, %arg1, %c0_i32, %c0_i32_0 : i32, i32, i32, i32
  }
  func.func @transform_1(%arg0: i32, %arg1: i32) -> (i32, i32) {
    %c0_i32 = arith.constant 0 : i32
    %c0_i32_0 = arith.constant 0 : i32
    %c0_i32_1 = arith.constant 0 : i32
    return %c0_i32, %c0_i32_0 : i32, i32
  }
  func.func @transform_2(%arg0: i32, %arg1: i32) -> (i32, i32) {
    %c0_i32 = arith.constant 0 : i32
    %c0_i32_0 = arith.constant 0 : i32
    %c0_i32_1 = arith.constant 0 : i32
    return %c0_i32, %c0_i32_0 : i32, i32
  }
  func.func @transform_3(%arg0: i32, %arg1: i32) -> (i32, i32) {
    %c0_i32 = arith.constant 0 : i32
    %c0_i32_0 = arith.constant 0 : i32
    %c0_i32_1 = arith.constant 0 : i32
    return %c0_i32, %c0_i32_0 : i32, i32
  }
  func.func @transform_4(%arg0: i32, %arg1: i32) -> (i32, i32) {
    %c0_i32 = arith.constant 0 : i32
    %c0_i32_0 = arith.constant 0 : i32
    %c0_i32_1 = arith.constant 0 : i32
    return %c0_i32, %c0_i32_0 : i32, i32
  }
  func.func @transform_5(%arg0: i32, %arg1: i32) -> (i32, i32, i32, i32) {
    %c0_i32 = arith.constant 0 : i32
    %c0_i32_0 = arith.constant 0 : i32
    %c0_i32_1 = arith.constant 0 : i32
    return %arg0, %arg1, %c0_i32, %c0_i32_0 : i32, i32, i32, i32
  }
}

</mosaic_0001>

<bundles_post_ra>
// kernel: scale_prediction_forward.3
= control target key start
LH: loop header
LB: loop body
LE: loop exit
PB: predicated region body
PF: predicated region fallthrough
CT: control target
= control target key end

     0   :  { %s859_s18 = smov 0   ;;  %s861_s19 = smov 0   ;;  %s999_s0 = inlined_call_operand.vmem [shape: bf16[2,16,16,8], index: 0, kind: input, shape index: {}]   ;;  %s1000_s1 = inlined_call_operand.vmem [shape: f32[1,8], index: 1, kind: input, shape index: {}]   ;;  %s1001_s2 = inlined_call_operand.vmem [shape: f32[1,8], index: 2, kind: input, shape index: {}]   ;;  %s1002_s3 = inlined_call_operand.vmem [shape: bf16[8,128], index: 3, kind: input, shape index: {}]   ;;  %s1003_s4 = inlined_call_operand.vmem [shape: f32[1,128], index: 4, kind: input, shape index: {}]   ;;  %s1004_s5 = inlined_call_operand.vmem [shape: f32[2,16,16,128], index: 5, kind: output, shape index: {}]  }
   0x1   :  { %s863_s20 = smov 0   ;;  %s865_s21 = smov 0  }
   0x2   :  { %s867_s22 = smov 0  }
   0x3 LB: > { %s24_s23 = sadd.s32 1, %s819_s20  ;;  %s27_s24 = sadd.s32 1, %s823_s21  ;;  %s827_s22 = sphi %s867_s22, %s15_s22   ;;  %s823_s21 = sphi %s865_s21, %s1008_s21   ;;  %s819_s20 = sphi %s863_s20, %s1007_s20   ;;  %s815_s19 = sphi %s861_s19, %s1006_s19   ;;  %s811_s18 = sphi %s859_s18, %s1005_s18  }
   0x4   : > { %p25_p0 = scmp.ge.s32.totalorder %s24_s23, 2  ;;  %p657_p1 = scmp.ge.s32.totalorder %s827_s22, 1 }
   0x5   : > { %p209_p2 = scmp.lt.s32.totalorder %s827_s22, 5 }
   0x6   : > { %s1010_s23 = smov (%p25_p0, %s24_s23), 0  ;;  %s1012_s24 = smov (!%p25_p0, %s27_s24), %s823_s21 }
   0x7   : > { %p210_p3 = pnand %p657_p1, %p209_p2  ;;  %p29_p4 = scmp.ge.s32.totalorder %s1012_s24, 2 }
   0x8   : > { %v404_v0 = vld [vmem:[%s1002_s3] sm:$0xf] (!%p210_p3)  ;;  %vm437_vm0 = vcmask (!%p210_p3), 1043456   ;;  %s658_s27 = sshll.u32 (!%p210_p3), %s811_s18, 3  ;;  %p248_p5 = scmp.lt.s32.totalorder (!%p210_p3), %s815_s19, 1  ;;  %vm412_vm1 = vcmask (!%p210_p3), 64512  }
   0x9   : > { %s1014_s24 = smov (%p29_p4, %s1012_s24), 0  ;;  %213 = sbr.rel (%p210_p3) target bundleno = 271 (0x10f), region = 40 }
   0xa   : > { %747 = vmatprep.subr.msk.bf16.mxu0 (!%p210_p3), %vm437_vm0, %v404_v0  ;;  %748 = vmatprep.subr.msk.bf16.mxu1 (!%p210_p3), %vm437_vm0, %v404_v0  ;;  %v439_v1 = vsel (!%p210_p3), %vm437_vm0, %v404_v0, 0  ;;  %p250_p6 = scmp.lt.s32.totalorder (!%p210_p3), %s658_s27, 15  ;;  %v903_v2 = vld [vmem:[%s1000_s1] ss:$0 sm:$0xff] (!%p210_p3) }
   0xb   : > { %728 = vmatpush3.bf16.msra.mxu0 (!%p210_p3), %v439_v1  ;;  %746 = vmatpush3.bf16.msra.mxu1 (!%p210_p3), %v439_v1  ;;  %v912_v11 = vld [vmem:[%s1001_s2] ss:$0 sm:$0xff] (!%p210_p3) }
  0x10   : > { %s1016_s19 = smov (!%p248_p5, %s815_s19), 1  ;;  %s1018_s27 = smov (!%p250_p6, %s658_s27), 15 }
  0x11   : > { %s660_s28 = sshll.u32 %s1016_s19, 5  ;;  %s659_s29 = sshll.u32 %s1018_s27, 1 }
  0x12   : > { %s892_s30 = sadd.s32 %s660_s28, %s659_s29 }
  0x13   : > { %s661_s6 = sshll.u32 %s892_s30, 2  ;;  %s665_s14 = sshll.u32 %s892_s30, 3 }
  0x14   : > { %s898_s9 = scalar_lea.vmem %s999_s0, %s661_s6  ;;  %s966_s19 = scalar_lea.vmem %s1004_s5, %s665_s14 }
  0x15   : > { %v680_v3 = vld [vmem:[%s898_s9] sm:$0xff]   ;;  %v711_v5 = vld [vmem:[%s898_s9 + $0x8] sm:$0xff]   ;;  %v712_v38 = vld [vmem:[%s898_s9 + $0x10] sm:$0xff]  }
  0x16   : > { %v714_v4 = vld [vmem:[%s898_s9 + $0x20] sm:$0xff]   ;;  %v681_v6 = vunpack.c.l.bf16 %v680_v3  ;;  %v682_v7 = vunpack.c.h.bf16 %v680_v3  ;;  %v715_v10 = vld [vmem:[%s898_s9 + $0x28] sm:$0xff]   ;;  %v685_v12 = vunpack.c.l.bf16 %v711_v5  ;;  %v686_v13 = vunpack.c.h.bf16 %v711_v5  ;;  %v716_v43 = vld [vmem:[%s898_s9 + $0x30] sm:$0xff]  }
  0x17   : > { %v697_v8 = vunpack.c.l.bf16 %v714_v4  ;;  %v698_v9 = vunpack.c.h.bf16 %v714_v4  ;;  %v701_v14 = vunpack.c.l.bf16 %v715_v10  ;;  %v702_v15 = vunpack.c.h.bf16 %v715_v10  ;;  %v713_v54 = vld [vmem:[%s898_s9 + $0x18] sm:$0xff]  }
  0x18   : > { %v309_v16 = vmul.f32 %v681_v6, %v903_v2  ;;  %v310_v17 = vmul.f32 %v682_v7, %v903_v2  ;;  %v311_v20 = vmul.f32 %v685_v12, %v903_v2  ;;  %v312_v21 = vmul.f32 %v686_v13, %v903_v2  ;;  %v717_v55 = vld [vmem:[%s898_s9 + $0x38] sm:$0xff]  }
  0x19   : > { %v317_v18 = vmul.f32 %v697_v8, %v903_v2  ;;  %v318_v19 = vmul.f32 %v698_v9, %v903_v2  ;;  %v319_v22 = vmul.f32 %v701_v14, %v903_v2  ;;  %v320_v23 = vmul.f32 %v702_v15, %v903_v2 }
  0x1a   : > { %v332_v24 = vadd.f32 %v912_v11, %v309_v16  ;;  %v333_v25 = vadd.f32 %v912_v11, %v310_v17  ;;  %v334_v28 = vadd.f32 %v912_v11, %v311_v20  ;;  %v335_v29 = vadd.f32 %v912_v11, %v312_v21 }
  0x1b   : > { %v340_v26 = vadd.f32 %v912_v11, %v317_v18  ;;  %v341_v27 = vadd.f32 %v912_v11, %v318_v19  ;;  %v342_v30 = vadd.f32 %v912_v11, %v319_v22  ;;  %v343_v31 = vadd.f32 %v912_v11, %v320_v23 }
  0x1c   : > { %vm348_vm2 = vcmp.ge.f32.partialorder %v332_v24, 0.0  ;;  %vm349_vm3 = vcmp.ge.f32.partialorder %v333_v25, 0.0  ;;  %v364_v32 = vmul.f32 0.1, %v332_v24  ;;  %v365_v33 = vmul.f32 0.1, %v333_v25 }
  0x1d   : > { %vm356_vm4 = vcmp.ge.f32.partialorder %v340_v26, 0.0  ;;  %vm357_vm5 = vcmp.ge.f32.partialorder %v341_v27, 0.0  ;;  %v372_v34 = vmul.f32 0.1, %v340_v26  ;;  %v373_v35 = vmul.f32 0.1, %v341_v27 }
  0x1e   : > { %v380_v36 = vsel %vm348_vm2, %v332_v24, %v364_v32  ;;  %v381_v37 = vsel %vm349_vm3, %v333_v25, %v365_v33  ;;  %vm350_vm6 = vcmp.ge.f32.partialorder %v334_v28, 0.0  ;;  %vm351_vm7 = vcmp.ge.f32.partialorder %v335_v29, 0.0 }
  0x1f   : > { %v396_v39 = vpack.c.bf16 %v381_v37, %v380_v36  ;;  %v388_v40 = vsel %vm356_vm4, %v340_v26, %v372_v34  ;;  %v389_v41 = vsel %vm357_vm5, %v341_v27, %v373_v35  ;;  %v366_v42 = vmul.f32 0.1, %v334_v28 }
  0x20   : > { %v400_v44 = vpack.c.bf16 %v389_v41, %v388_v40  ;;  %v367_v45 = vmul.f32 0.1, %v335_v29  ;;  %vm358_vm8 = vcmp.ge.f32.partialorder %v342_v30, 0.0  ;;  %vm359_vm9 = vcmp.ge.f32.partialorder %v343_v31, 0.0 }
  0x21   : > { %729 = vmatprep.mubr.msk.bf16.mxu0 %vm412_vm1, %v396_v39  ;;  %v382_v46 = vsel %vm350_vm6, %v334_v28, %v366_v42  ;;  %v374_v47 = vmul.f32 0.1, %v342_v30  ;;  %v375_v48 = vmul.f32 0.1, %v343_v31  ;;  %v689_v49 = vunpack.c.l.bf16 %v712_v38 }
  0x22   : > { %737 = vmatprep.mubr.msk.bf16.mxu1 %vm412_vm1, %v400_v44  ;;  %v383_v50 = vsel %vm351_vm7, %v335_v29, %v367_v45  ;;  %v690_v51 = vunpack.c.h.bf16 %v712_v38  ;;  %v705_v52 = vunpack.c.l.bf16 %v716_v43  ;;  %v706_v53 = vunpack.c.h.bf16 %v716_v43 }
  0x23   : > { %v397_v56 = vpack.c.bf16 %v383_v50, %v382_v46  ;;  %v390_v57 = vsel %vm358_vm8, %v342_v30, %v374_v47  ;;  %v391_v58 = vsel %vm359_vm9, %v343_v31, %v375_v48  ;;  %v313_v59 = vmul.f32 %v689_v49, %v903_v2 }
  0x24   : > { %v401_v60 = vpack.c.bf16 %v391_v58, %v390_v57  ;;  %v314_v61 = vmul.f32 %v690_v51, %v903_v2  ;;  %v321_v62 = vmul.f32 %v705_v52, %v903_v2  ;;  %v322_v63 = vmul.f32 %v706_v53, %v903_v2 }
  0x25   : > { %730 = vmatmul.mubr.msk.bf16.vlgmr.msra.gmra.mrb[0].mxu0 %vm412_vm1, %v397_v56  ;;  %v336_v0 = vadd.f32 %v912_v11, %v313_v59  ;;  %v693_v1 = vunpack.c.l.bf16 %v713_v54  ;;  %v694_v3 = vunpack.c.h.bf16 %v713_v54  ;;  %v709_v4 = vunpack.c.l.bf16 %v717_v55 }
  0x26   : > { %738 = vmatmul.mubr.msk.bf16.vlgmr.msra.gmra.mrb[0].mxu1 %vm412_vm1, %v401_v60  ;;  %v337_v5 = vadd.f32 %v912_v11, %v314_v61  ;;  %v344_v6 = vadd.f32 %v912_v11, %v321_v62  ;;  %v345_v7 = vadd.f32 %v912_v11, %v322_v63  ;;  %v710_v8 = vunpack.c.h.bf16 %v717_v55 }
  0x27   : > { %vm352_vm10 = vcmp.ge.f32.partialorder %v336_v0, 0.0  ;;  %v368_v9 = vmul.f32 0.1, %v336_v0  ;;  %v315_v10 = vmul.f32 %v693_v1, %v903_v2  ;;  %v316_v12 = vmul.f32 %v694_v3, %v903_v2 }
  0x28   : > { %vm353_vm11 = vcmp.ge.f32.partialorder %v337_v5, 0.0  ;;  %v369_v13 = vmul.f32 0.1, %v337_v5  ;;  %vm360_vm12 = vcmp.ge.f32.partialorder %v344_v6, 0.0  ;;  %vm361_vm13 = vcmp.ge.f32.partialorder %v345_v7, 0.0 }
  0x29   : > { %v384_v14 = vsel %vm352_vm10, %v336_v0, %v368_v9  ;;  %v376_v15 = vmul.f32 0.1, %v344_v6  ;;  %v377_v16 = vmul.f32 0.1, %v345_v7  ;;  %v338_v17 = vadd.f32 %v912_v11, %v315_v10 }
  0x2a   : > { %v385_v18 = vsel %vm353_vm11, %v337_v5, %v369_v13  ;;  %v339_v19 = vadd.f32 %v912_v11, %v316_v12  ;;  %v323_v20 = vmul.f32 %v709_v4, %v903_v2  ;;  %v324_v21 = vmul.f32 %v710_v8, %v903_v2 }
  0x2b   : > { %v398_v22 = vpack.c.bf16 %v385_v18, %v384_v14  ;;  %v392_v23 = vsel %vm360_vm12, %v344_v6, %v376_v15  ;;  %v393_v24 = vsel %vm361_vm13, %v345_v7, %v377_v16  ;;  %vm354_vm14 = vcmp.ge.f32.partialorder %v338_v17, 0.0 }
  0x2c   : > { %v402_v25 = vpack.c.bf16 %v393_v24, %v392_v23  ;;  %vm355_vm15 = vcmp.ge.f32.partialorder %v339_v19, 0.0  ;;  %v370_v26 = vmul.f32 0.1, %v338_v17  ;;  %v371_v27 = vmul.f32 0.1, %v339_v19 }
  0x2d   : > { %733 = vmatprep.mubr.msk.bf16.mxu0 %vm412_vm1, %v398_v22  ;;  %v346_v28 = vadd.f32 %v912_v11, %v323_v20  ;;  %v347_v29 = vadd.f32 %v912_v11, %v324_v21  ;;  %v668_v11 = vld [vmem:[%s1003_s4] ss:$0 sm:$0xff] }
  0x2e   : > { %741 = vmatprep.mubr.msk.bf16.mxu1 %vm412_vm1, %v402_v25  ;;  %v386_v30 = vsel %vm354_vm14, %v338_v17, %v370_v26  ;;  %v387_v31 = vsel %vm355_vm15, %v339_v19, %v371_v27 }
  0x2f   : > { %v399_v2 = vpack.c.bf16 %v387_v31, %v386_v30  ;;  %vm362_vm0 = vcmp.ge.f32.partialorder %v346_v28, 0.0  ;;  %vm363_vm2 = vcmp.ge.f32.partialorder %v347_v29, 0.0  ;;  %v378_v32 = vmul.f32 0.1, %v346_v28 }
  0x30   : > { %v379_v33 = vmul.f32 0.1, %v347_v29 }
  0x31   : > { %734 = vmatmul.mubr.msk.bf16.gmra.mrb[4].mxu0 %vm412_vm1, %v399_v2  ;;  %v394_v34 = vsel %vm362_vm0, %v346_v28, %v378_v32 }
  0x32   : > { %v395_v35 = vsel %vm363_vm2, %v347_v29, %v379_v33 }
  0x33   : > { %v403_v36 = vpack.c.bf16 %v395_v35, %v394_v34 }
  0x35   : > { %742 = vmatmul.mubr.msk.bf16.gmra.mrb[4].mxu1 %vm412_vm1, %v403_v36 }
  0xf8   : > { %v731_v37 = vpop.f32.mrb[0].mxu0 }
  0xf9   : > { %v484_v38 = vadd.f32 %v731_v37, %v668_v11  ;;  %v739_v39 = vpop.f32.mrb[0].mxu1  ;;  %v475_v40 = vpop.f32.mrb[1].mxu0 }
  0xfa   : > { %v516_v41 = vadd.f32 %v739_v39, %v668_v11  ;;  %v476_v42 = vadd.f32 %v668_v11, %v475_v40  ;;  %v507_v43 = vpop.f32.mrb[1].mxu1  ;;  %v732_v44 = vpop.f32.mrb[2].mxu0 }
  0xfb   : > { %540 = vst [vmem:[%s966_s19 + $0x10] sm:$0xff] %v484_v38  ;;  %v508_v45 = vadd.f32 %v668_v11, %v507_v43  ;;  %v487_v46 = vadd.f32 %v732_v44, %v668_v11  ;;  %v740_v47 = vpop.f32.mrb[2].mxu1  ;;  %v478_v48 = vpop.f32.mrb[3].mxu0 }
  0xfc   : > { %548 = vst [vmem:[%s966_s19 + $0x50] sm:$0xff] %v516_v41  ;;  %538 = vst [vmem:[%s966_s19] sm:$0xff] %v476_v42  ;;  %v519_v49 = vadd.f32 %v740_v47, %v668_v11  ;;  %v479_v50 = vadd.f32 %v668_v11, %v478_v48  ;;  %v510_v51 = vpop.f32.mrb[3].mxu1 }
  0xfd   : > { %546 = vst [vmem:[%s966_s19 + $0x40] sm:$0xff] %v508_v45  ;;  %541 = vst [vmem:[%s966_s19 + $0x18] sm:$0xff] %v487_v46  ;;  %v511_v52 = vadd.f32 %v668_v11, %v510_v51 }
  0xfe   : > { %549 = vst [vmem:[%s966_s19 + $0x58] sm:$0xff] %v519_v49  ;;  %539 = vst [vmem:[%s966_s19 + $0x8] sm:$0xff] %v479_v50 }
  0xff   : > { %547 = vst [vmem:[%s966_s19 + $0x48] sm:$0xff] %v511_v52 }
 0x104   : > { %v735_v53 = vpop.f32.mrb[4].mxu0 }
 0x105   : > { %v500_v54 = vadd.f32 %v735_v53, %v668_v11  ;;  %v491_v55 = vpop.f32.mrb[5].mxu0 }
 0x106   : > { %v492_v56 = vadd.f32 %v668_v11, %v491_v55  ;;  %v736_v57 = vpop.f32.mrb[6].mxu0 }
 0x107   : > { %544 = vst [vmem:[%s966_s19 + $0x30] sm:$0xff] %v500_v54  ;;  %v503_v58 = vadd.f32 %v736_v57, %v668_v11  ;;  %v494_v59 = vpop.f32.mrb[7].mxu0 }
 0x108   : > { %v743_v60 = vpop.f32.mrb[4].mxu1  ;;  %542 = vst [vmem:[%s966_s19 + $0x20] sm:$0xff] %v492_v56  ;;  %v495_v61 = vadd.f32 %v668_v11, %v494_v59 }
 0x109   : > { %v532_v62 = vadd.f32 %v743_v60, %v668_v11  ;;  %v523_v63 = vpop.f32.mrb[5].mxu1  ;;  %545 = vst [vmem:[%s966_s19 + $0x38] sm:$0xff] %v503_v58 }
 0x10a   : > { %v524_v0 = vadd.f32 %v668_v11, %v523_v63  ;;  %v744_v1 = vpop.f32.mrb[6].mxu1  ;;  %543 = vst [vmem:[%s966_s19 + $0x28] sm:$0xff] %v495_v61 }
 0x10b   : > { %552 = vst [vmem:[%s966_s19 + $0x70] sm:$0xff] %v532_v62  ;;  %v535_v3 = vadd.f32 %v744_v1, %v668_v11  ;;  %v526_v4 = vpop.f32.mrb[7].mxu1 }
 0x10c   : > { %550 = vst [vmem:[%s966_s19 + $0x60] sm:$0xff] %v524_v0  ;;  %v527_v5 = vadd.f32 %v668_v11, %v526_v4 }
 0x10d   : > { %553 = vst [vmem:[%s966_s19 + $0x78] sm:$0xff] %v535_v3 }
 0x10e   : > { %551 = vst [vmem:[%s966_s19 + $0x68] sm:$0xff] %v527_v5 }
 0x10f PF: > { %s15_s22 = sadd.s32 1, %s827_s22   ;;  %s1005_s18 = smov %s819_s20 }
 0x110   : > { %p12_p7 = scmp.ge.s32.totalorder %s15_s22, 6   ;;  %s1006_s19 = smov %s823_s21 }
 0x111   : > { %s1007_s20 = smov %s1010_s23  ;;  %s1008_s21 = smov %s1014_s24 }
 0x112   :  { %14 = sbr.rel (!%p12_p7) target bundleno = 3 (0x3), region = 70 }

// kernel: scale_prediction_forward.2
= control target key start
LH: loop header
LB: loop body
LE: loop exit
PB: predicated region body
PF: predicated region fallthrough
CT: control target
= control target key end

     0   :  { %s3013_s12 = smov 0   ;;  %s3015_s13 = smov 0   ;;  %s3991_s0 = inlined_call_operand.vmem [shape: bf16[2,18,18,4], index: 0, kind: input, shape index: {}]   ;;  %s3992_s1 = inlined_call_operand.vmem [shape: bf16[3,3,4,8], index: 1, kind: input, shape index: {}]   ;;  %s3993_s2 = inlined_call_operand.vmem [shape: bf16[2,16,16,8], index: 2, kind: output, shape index: {0}]   ;;  %s3994_s3 = inlined_call_operand.vmem [shape: f32[2,2,2,8], index: 3, kind: output, shape index: {1}]  }
   0x1   :  { %s3017_s14 = smov 0   ;;  %s3019_s15 = smov 0  }
   0x2   :  { %s3021_s16 = smov 0  }
   0x3 LB: > { %s23_s17 = sadd.s32 1, %s2982_s14  ;;  %s26_s18 = sadd.s32 1, %s2986_s15  ;;  %s2990_s16 = sphi %s3021_s16, %s14_s16   ;;  %s2986_s15 = sphi %s3019_s15, %s4022_s15   ;;  %s2982_s14 = sphi %s3017_s14, %s4021_s14   ;;  %s2978_s13 = sphi %s3015_s13, %s4020_s13   ;;  %s2974_s12 = sphi %s3013_s12, %s4019_s12  }
   0x4   : > { %p24_p0 = scmp.ge.s32.totalorder %s23_s17, 2  ;;  %p2479_p1 = scmp.ge.s32.totalorder %s2990_s16, 1 }
   0x5   : > { %p156_p2 = scmp.lt.s32.totalorder %s2990_s16, 5 }
   0x6   : > { %s4024_s17 = smov (%p24_p0, %s23_s17), 0  ;;  %s4026_s18 = smov (!%p24_p0, %s26_s18), %s2986_s15 }
   0x7   : > { %p157_p3 = pnand %p2479_p1, %p156_p2  ;;  %p28_p4 = scmp.ge.s32.totalorder %s4026_s18, 2 }
   0x9   : > { %s4028_s18 = smov (%p28_p4, %s4026_s18), 0  ;;  %160 = sbr.rel (%p157_p3) target bundleno = 424 (0x1a8), region = 28 }
  0x10   : > { %v285_v0 = vld [vmem:[%s3992_s1] sm:$0x3]  ;;  %vm351_vm0 = vcmask 1041408   ;;  %p193_p5 = scmp.lt.s32.totalorder %s2978_s13, 1  ;;  %v2506_v2 = vld [vmem:[%s3992_s1 + $0x6] sm:$0x3] }
  0x11   : > { %2891 = vmatprep.subr.msk.bf16.mxu1 %vm351_vm0, %v285_v0  ;;  %v353_v1 = vsel %vm351_vm0, %v285_v0, 0  ;;  %2890 = vmatprep.subr.msk.bf16.mxu0 %vm351_vm0, %v285_v0  ;;  %v2516_v3 = vld [vmem:[%s3992_s1 + $0xc] sm:$0x3]  ;;  %s2628_s25 = smul.u32 96, %s2974_s12  ;;  %vm326_vm1 = vcmask 31744   ;;  %v511_v10 = vsel %vm351_vm0, %v2506_v2, 0 }
  0x12   : > { %2889 = vmatpush3.bf16.msra.mxu1 %v353_v1  ;;  %s4030_s13 = smov (!%p193_p5, %s2978_s13), 1  ;;  %2727 = vmatpush3.bf16.msra.mxu0 %v353_v1  ;;  %v2526_v13 = vld [vmem:[%s3992_s1 + $0x2] sm:$0x3]  ;;  %v2543_v17 = vld [vmem:[%s3992_s1 + $0x8] sm:$0x3]  ;;  %v669_v20 = vsel %vm351_vm0, %v2516_v3, 0 }
  0x13   : > { %2892 = vmatprep.subr.msk.bf16.mxu1 %vm351_vm0, %v2506_v2  ;;  %2893 = vmatprep.subr.msk.bf16.mxu0 %vm351_vm0, %v2516_v3  ;;  %s2900_s26 = smul.u32 216, %s4030_s13  ;;  %v3116_v18 = vld [vmem:[%s3992_s1 + $0xe] sm:$0x3]  ;;  %v3126_v21 = vld [vmem:[%s3992_s1 + $0x4] sm:$0x3]  ;;  %v3136_v24 = vsel %vm351_vm0, %v2526_v13, 0 }
  0x14   : > { %v3139_v25 = vsel %vm351_vm0, %v2543_v17, 0  ;;  %v3143_v26 = vsel %vm351_vm0, %v3116_v18, 0  ;;  %v3150_v30 = vsel %vm351_vm0, %v3126_v21, 0  ;;  %vm800_vm2 = vsmask.f32 3328  ;;  %s2481_s23 = sshll.u32 %s2974_s12, 3 }
  0x15   : > { %s197_s29 = scalar_lea.vmem %s3991_s0, %s2900_s26  ;;  %3997 = vst [vmem:[#allocation3_spill] sm:$0xff] %v3150_v30  ;;  %vm801_vm3 = vsmask.f32 7440  ;;  %vm1561_vm4 = vcmask 1042432   ;;  %vm1562_vm5 = vcmask 1046532   ;;  %vm252_vm8 = vcmask 64512  }
  0x16   : > { %s3066_s30 = scalar_lea.vmem %s197_s29, %s2628_s25  ;;  %vm3307_vm6 = vmor %vm800_vm2, %vm801_vm3  ;;  %p3848_p6 = scmp.lt.s32.totalorder %s2481_s23, 15  ;;  %vm2226_vm9 = vcmask 60416   ;;  %vm2280_vm10 = vcmask 57344  }
  0x17   : > { %v3069_v4 = vld [vmem:[%s3066_s30 + $0x30] sm:$0xf]  ;;  %v3072_v5 = vld [vmem:[%s3066_s30 + $0x34] sm:$0xf]  ;;  %v3075_v6 = vld [vmem:[%s3066_s30 + $0x3c] sm:$0xf] }
  0x18   : > { %v3079_v7 = vcombine.low %v3069_v4, %v3072_v5  ;;  %v3082_v8 = vld [vmem:[%s3066_s30 + $0x40] sm:$0xf]  ;;  %v3095_v12 = vld [vmem:[%s3066_s30 + $0x4] sm:$0xf]  ;;  %v3105_v15 = vld [vmem:[%s3066_s30 + $0xc] sm:$0xf] }
  0x19   : > { %v3086_v9 = vcombine.low %v3075_v6, %v3082_v8  ;;  %v3090_v11 = vld [vmem:[%s3066_s30] sm:$0xf]  ;;  %v3108_v16 = vld [vmem:[%s3066_s30 + $0x10] sm:$0xf]  ;;  %v3129_v22 = vld [vmem:[%s3066_s30 + $0x48] sm:$0xf] }
  0x1a   : > { %2736 = vmatprep.mubr.msk.bf16.mxu1 %vm326_vm1, %v3079_v7  ;;  %v2490_v14 = vcombine.low %v3090_v11, %v3095_v12  ;;  %v2491_v19 = vcombine.low %v3105_v15, %v3108_v16  ;;  %v3132_v23 = vld [vmem:[%s3066_s30 + $0x4c] sm:$0xf]  ;;  %v900_v27 = vshrl.u32 %v3069_v4, 16  ;;  %v804_v28 = vshrl.u32 %v3090_v11, 16  ;;  %v3159_v34 = vld [vmem:[%s3066_s30 + $0x54] sm:$0xf]  ;;  %vm3365_vm7 = vmor %vm1561_vm4, %vm1562_vm5 }
  0x1b   : > { %2737 = vmatmul.mubr.msk.bf16.vlgmr.msra.gmra.mrb[0].mxu1 %vm326_vm1, %v3086_v9  ;;  %v807_v29 = vshll.u32 %v3090_v11, 16  ;;  %v813_v31 = vshll.u32 %v3095_v12, 16  ;;  %v817_v32 = vshrl.u32 %v3095_v12, 16  ;;  %v3156_v33 = vcombine.low %v3129_v22, %v3132_v23  ;;  %v3162_v35 = vld [vmem:[%s3066_s30 + $0x58] sm:$0xf]  ;;  %s4032_s23 = smov (!%p3848_p6, %s2481_s23), 15 }
  0x1c   : > { %2745 = vmatpush3.bf16.msra.mxu1 %v511_v10  ;;  %2728 = vmatprep.mubr.msk.bf16.mxu0 %vm326_vm1, %v2490_v14  ;;  %v903_v36 = vshll.u32 %v3069_v4, 16  ;;  %v909_v37 = vshll.u32 %v3072_v5, 16  ;;  %v3168_v38 = vld [vmem:[%s3066_s30 + $0x18] sm:$0xf]  ;;  %v3171_v39 = vld [vmem:[%s3066_s30 + $0x1c] sm:$0xf]  ;;  %v3187_v47 = vcombine.low %v3159_v34, %v3162_v35 }
  0x1d   : > { %2894 = vmatprep.subr.msk.bf16.mxu1 %vm351_vm0, %v2526_v13  ;;  %2729 = vmatmul.mubr.msk.bf16.vlgmr.msra.gmra.mrb[0].mxu0 %vm326_vm1, %v2491_v19  ;;  %v913_v40 = vshrl.u32 %v3072_v5, 16  ;;  %v3178_v42 = vld [vmem:[%s3066_s30 + $0x24] sm:$0xf]  ;;  %v3181_v43 = vld [vmem:[%s3066_s30 + $0x28] sm:$0xf]  ;;  %v806_v45 = vrot.slane %v804_v28, 4  ;;  %v2492_v51 = vcombine.low %v3168_v38, %v3171_v39 }
  0x1e   : > { %2763 = vmatpush3.bf16.msra.mxu0 %v669_v20  ;;  %2740 = vmatprep.mubr.msk.bf16.mxu1 %vm326_vm1, %v3156_v33  ;;  %v3996_v46 = vrot.slane %v3095_v12, 5  ;;  %v809_v48 = vrot.slane %v807_v29, 5  ;;  %v3189_v49 = vrot.slane %v813_v31, 5  ;;  %v819_v50 = vrot.slane %v817_v32, 4  ;;  %v3253_v41 = vld [vmem:[%s3066_s30 + $0x14] sm:$0x1] }
  0x1f   : > { %2895 = vmatprep.subr.msk.bf16.mxu0 %vm351_vm0, %v2543_v17  ;;  %v3193_v52 = vrot.slane %v900_v27, 4  ;;  %v828_v53 = vshrl.u32 %v3105_v15, 16  ;;  %v831_v54 = vshll.u32 %v3105_v15, 16  ;;  %v2493_v55 = vcombine.low %v3178_v42, %v3181_v43  ;;  %2732 = vmatprep.mubr.msk.bf16.mxu0 %vm326_vm1, %v2492_v51  ;;  %v3320_v63 = vld [vmem:[%s3066_s30 + $0x44] sm:$0x1]  ;;  %s2482_s25 = sshll.u32 %s4032_s23, 1 }
  0x20   : > { %v3201_v56 = vrot.slane %v903_v36, 5  ;;  %v3203_v57 = vrot.slane %v909_v37, 5  ;;  %v837_v58 = vshll.u32 %v3108_v16, 16  ;;  %v841_v59 = vshrl.u32 %v3108_v16, 16  ;;  %s2483_s26 = sshll.u32 %s4030_s13, 5  ;;  %p211_p7 = scmp.lt.s32.totalorder %s2974_s12, 1 }
  0x21   : > { %v3209_v60 = vrot.slane %v913_v40, 4  ;;  %v924_v61 = vshrl.u32 %v3075_v6, 16  ;;  %v927_v62 = vshll.u32 %v3075_v6, 16  ;;  %v810_v0 = vor.u32 %v809_v48, %v806_v45  ;;  %s205_s27 = sadd.s32 %s2483_s26, %s2482_s25  ;;  %s2485_s5 = sshll.u32 %s4030_s13, 1 }
  0x22   : > { %v820_v1 = vor.u32 %v819_v50, %v3189_v49  ;;  %v3219_v3 = vrot.slane %v3996_v46, 4  ;;  %v830_v10 = vrot.slane %v828_v53, 4  ;;  %v833_v13 = vrot.slane %v831_v54, 5  ;;  %s2484_s28 = sshll.u32 %s205_s27, 2  ;;  %s4034_s12 = smov (!%p211_p7, %s2974_s12), 1 }
  0x23   : > { %2741 = vmatmul.mubr.msk.bf16.gmra.mrb[4].mxu1 %vm326_vm1, %v3187_v47  ;;  %v3995_v17 = vrot.slane %v3108_v16, 5  ;;  %v843_v20 = vrot.slane %v841_v59, 4  ;;  %v852_v27 = vshrl.u32 %v3168_v38, 16  ;;  %v855_v28 = vshll.u32 %v3168_v38, 16  ;;  %s3879_s4 = scalar_lea.vmem %s3993_s2, %s2484_s28  ;;  %s214_s6 = sadd.s32 %s2485_s5, %s4034_s12 }
  0x24   : > { %2746 = vmatprep.mubr.msk.bf16.mxu1 %vm326_vm1, %v2491_v19  ;;  %v3224_v19 = vrot.slane %v837_v58, 5  ;;  %v865_v29 = vshrl.u32 %v3171_v39, 16  ;;  %v876_v31 = vshrl.u32 %v3178_v42, 16  ;;  %v879_v32 = vshll.u32 %v3178_v42, 16  ;;  %s2486_s7 = sshll.u32 %s214_s6, 1 }
  0x25   : > { %2733 = vmatmul.mubr.msk.bf16.gmra.mrb[4].mxu0 %vm326_vm1, %v2493_v55  ;;  %v861_v36 = vshll.u32 %v3171_v39, 16  ;;  %v3232_v37 = vrot.slane %v810_v0, 4  ;;  %v3234_v40 = vrot.slane %v820_v1, 4  ;;  %v889_v45 = vshrl.u32 %v3181_v43, 16  ;;  %v3250_v1 = vld [vmem:[%s3066_s30 + $0x8] sm:$0x1]  ;;  %s216_s10 = scalar_lea.vmem %s3994_s3, %s2486_s7 }
  0x26   : > { %2764 = vmatprep.mubr.msk.bf16.mxu0 %vm326_vm1, %v2492_v51  ;;  %v885_v48 = vshll.u32 %v3181_v43, 16  ;;  %v3240_v50 = vrot.slane %v3995_v17, 4  ;;  %v834_v59 = vor.u32 %v833_v13, %v830_v10  ;;  %v844_v0 = vor.u32 %v843_v20, %v3224_v19  ;;  %v3285_v17 = vld [vmem:[%s3066_s30 + $0x64] sm:$0xf] }
  0x27   : > { %v854_v44 = vrot.slane %v852_v27, 4  ;;  %v857_v14 = vrot.slane %v855_v28, 5  ;;  %v3261_v10 = vrot.slane %v861_v36, 5  ;;  %v878_v13 = vrot.slane %v876_v31, 4  ;;  %v3274_v36 = vld [vmem:[%s3066_s30 + $0x60] sm:$0xf] }
  0x28   : > { %v881_v20 = vrot.slane %v879_v32, 5  ;;  %v891_v28 = vrot.slane %v889_v45, 4  ;;  %v847_v31 = vshll.u32 %v3253_v41, 16  ;;  %v3281_v32 = vld [vmem:[%s3066_s30 + $0x38] sm:$0x1]  ;;  %v845_v54 = vrot.slane %v844_v0, 4 }
  0x29   : > { %v919_v27 = vshll.u32 %v3281_v32, 16  ;;  %v929_v0 = vrot.slane %v927_v62, 5  ;;  %v1197_v62 = vshll.u32 %v3274_v36, 16  ;;  %v1207_v30 = vshrl.u32 %v3285_v17, 16 }
  0x2a   : > { %v882_v2 = vor.u32 %v881_v20, %v878_v13  ;;  %v849_v13 = vrot.slane %v847_v31, 5 }
  0x2b   : > { %2747 = vmatmul.mubr.msk.bf16.vlgmr.msra.gmra.mrb[8].mxu1 %vm326_vm1, %v2492_v51  ;;  %v3259_v51 = vld [vmem:[%s3066_s30 + $0x20] sm:$0x1] }
  0x2c   : > { %2781 = vmatpush3.bf16.msra.mxu1 %v3136_v24  ;;  %2750 = vmatprep.mubr.msk.bf16.mxu1 %vm326_vm1, %v2493_v55  ;;  %v867_v24 = vrot.slane %v865_v29, 4  ;;  %v823_v29 = vshll.u32 %v3250_v1, 16  ;;  %v871_v45 = vshll.u32 %v3259_v51, 16 }
  0x2d   : > { %2765 = vmatmul.mubr.msk.bf16.vlgmr.msra.gmra.mrb[8].mxu0 %vm326_vm1, %v2493_v55  ;;  %2896 = vmatprep.subr.msk.bf16.mxu1 %vm351_vm0, %v3116_v18  ;;  %v3269_v55 = vld [vmem:[%s3066_s30 + $0x2c] sm:$0x1]  ;;  %v3271_v18 = vrot.slane %v885_v48, 5  ;;  %v858_v48 = vor.u32 %v857_v14, %v854_v44  ;;  %v3300_v44 = vcombine.low %v3274_v36, %v3285_v17  ;;  %v921_v14 = vrot.slane %v919_v27, 5 }
  0x2e   : > { %2799 = vmatpush3.bf16.msra.mxu0 %v3139_v25  ;;  %2768 = vmatprep.mubr.msk.bf16.mxu0 %vm326_vm1, %v3079_v7  ;;  %v835_v25 = vrot.slane %v834_v59, 4  ;;  %v868_v58 = vor.u32 %v867_v24, %v3261_v10  ;;  %v895_v46 = vshll.u32 %v3269_v55, 16  ;;  %v916_v59 = vor.u32 %v3209_v60, %v3203_v57 }
  0x2f   : > { %2897 = vmatprep.subr.msk.bf16.mxu0 %vm351_vm0, %v3126_v21  ;;  %v906_v21 = vor.u32 %v3201_v56, %v3193_v52  ;;  %v892_v53 = vor.u32 %v891_v28, %v3271_v18  ;;  %v825_v24 = vrot.slane %v823_v29, 5  ;;  %v859_v56 = vrot.slane %v858_v48, 4 }
  0x30   : > { %v926_v60 = vrot.slane %v924_v61, 4  ;;  %v869_v20 = vrot.slane %v868_v58, 4  ;;  %v883_v28 = vrot.slane %v882_v2, 4  ;;  %v897_v29 = vrot.slane %v895_v46, 5  ;;  %v3333_v2 = vld [vmem:[%s3066_s30 + $0x6c] sm:$0xf] }
  0x31   : > { %v907_v31 = vrot.slane %v906_v21, 4  ;;  %v893_v48 = vrot.slane %v892_v53, 4  ;;  %v933_v61 = vshll.u32 %v3082_v8, 16  ;;  %v840_v46 = vsel %vm3307_vm6, %v835_v25, %v3224_v19  ;;  %v3336_v53 = vld [vmem:[%s3066_s30 + $0x70] sm:$0xf] }
  0x32   : > { %v826_v58 = vsel %vm3307_vm6, %v3234_v40, %v825_v24  ;;  %v850_v27 = vsel %vm3307_vm6, %v845_v54, %v849_v13  ;;  %v888_v25 = vsel %vm3307_vm6, %v883_v28, %v3271_v18  ;;  %v943_v21 = vshll.u32 %v3320_v63, 16 }
  0x33   : > { %2751 = vmatmul.mubr.msk.bf16.gmra.mrb[12].mxu1 %vm326_vm1, %v3079_v7  ;;  %v873_v7 = vrot.slane %v871_v45, 5  ;;  %v917_v45 = vrot.slane %v916_v59, 4  ;;  %v912_v40 = vsel %vm3307_vm6, %v907_v31, %v3203_v57  ;;  %v898_v54 = vsel %vm3307_vm6, %v893_v48, %v897_v29 }
  0x34   : > { %2754 = vmatprep.mubr.msk.bf16.mxu1 %vm326_vm1, %v3086_v9  ;;  %v3359_v59 = vrot.slane %v933_v61, 5  ;;  %v4000_v24 = vshrl.u32 %v3082_v8, 16  ;;  %v2517_v57 = vcombine.low %v3333_v2, %v3336_v53  ;;  %v3382_v28 = vcombine.low %v840_v46, %v850_v27 }
  0x35   : > { %2769 = vmatmul.mubr.msk.bf16.gmra.mrb[12].mxu0 %vm326_vm1, %v3086_v9  ;;  %v816_v9 = vsel %vm3307_vm6, %v3232_v37, %v3189_v49  ;;  %v864_v49 = vsel %vm3307_vm6, %v859_v56, %v3261_v10  ;;  %v930_v37 = vor.u32 %v929_v0, %v926_v60  ;;  %v874_v19 = vsel %vm3307_vm6, %v869_v20, %v873_v7  ;;  %v3374_v7 = vld [vmem:[%s3066_s30 + $0x50] sm:$0x1] }
  0x36   : > { %2772 = vmatprep.mubr.msk.bf16.mxu0 %vm326_vm1, %v3156_v33  ;;  %v922_v10 = vsel %vm3307_vm6, %v917_v45, %v921_v14  ;;  %v939_v13 = vrot.slane %v4000_v24, 4  ;;  %v2527_v56 = vcombine.low %v816_v9, %v826_v58  ;;  %v4003_v14 = vshrl.u32 %v3129_v22, 16 }
  0x37   : > { %v4004_v0 = vshll.u32 %v3129_v22, 16  ;;  %v3384_v29 = vcombine.low %v864_v49, %v874_v19  ;;  %v957_v31 = vshll.u32 %v3132_v23, 16  ;;  %v3391_v48 = vcombine.low %v888_v25, %v898_v54 }
  0x38   : > { %v950_v60 = vrot.slane %v4003_v14, 4  ;;  %v3393_v45 = vcombine.low %v912_v40, %v922_v10  ;;  %v3395_v61 = vrot.slane %v943_v21, 5  ;;  %v4005_v9 = vrot.slane %v3095_v12, 5 }
  0x39   : > { %v953_v20 = vrot.slane %v4004_v0, 5  ;;  %v4006_v46 = vrot.slane %v3090_v11, 9  ;;  %v940_v27 = vor.u32 %v939_v13, %v3359_v59  ;;  %v1569_v19 = vrot.slane %v3250_v1, 5 }
  0x3a   : > { %v4008_v11 = vshrl.u32 %v3159_v34, 16  ;;  %v4009_v40 = vrot.slane %v3108_v16, 5  ;;  %v4010_v21 = vrot.slane %v3105_v15, 9  ;;  %v1576_v10 = vrot.slane %v3253_v41, 5 }
  0x3b   : > { %2755 = vmatmul.mubr.msk.bf16.gmra.mrb[16].mxu1 %vm326_vm1, %v3156_v33  ;;  %v3386_v33 = vrot.slane %v930_v37, 4  ;;  %v3403_v58 = vsel %vm3365_vm7, %v4006_v46, %v4005_v9  ;;  %v967_v37 = vshll.u32 %v3374_v7, 16  ;;  %v954_v12 = vor.u32 %v953_v20, %v950_v60 }
  0x3c   : > { %2758 = vmatprep.mubr.msk.bf16.mxu1 %vm326_vm1, %v3187_v47  ;;  %v3416_v25 = vrot.slane %v4008_v11, 4  ;;  %v1574_v54 = vsel %vm3365_vm7, %v4010_v21, %v4009_v40  ;;  %v3429_v1 = vrot.slane %v957_v31, 5  ;;  %v4011_v13 = vshll.u32 %v3159_v34, 16  ;;  %v3488_v21 = vld [vmem:[%s3066_s30 + $0x5c] sm:$0x1] }
  0x3d   : > { %2773 = vmatmul.mubr.msk.bf16.gmra.mrb[16].mxu0 %vm326_vm1, %v3187_v47  ;;  %v4007_v47 = vshrl.u32 %v3132_v23, 16  ;;  %v936_v24 = vsel %vm3307_vm6, %v3386_v33, %v3359_v59  ;;  %v3438_v15 = vsel %vm3365_vm7, %v3219_v3, %v1569_v19  ;;  %v1577_v41 = vsel %vm3365_vm7, %v3240_v50, %v1576_v10 }
  0x3e   : > { %2776 = vmatprep.mubr.msk.bf16.mxu0 %vm326_vm1, %v3300_v44  ;;  %v3433_v14 = vrot.slane %v4011_v13, 5  ;;  %v2572_v16 = vcombine.low %v3403_v58, %v3438_v15  ;;  %v2565_v60 = vrot.slane %v3168_v38, 9  ;;  %v1580_v0 = vrot.slane %v3171_v39, 5 }
  0x3f   : > { %v3410_v49 = vrot.slane %v4007_v47, 4  ;;  %v3447_v20 = vrot.slane %v967_v37, 5  ;;  %v3449_v31 = vcombine.low %v1574_v54, %v1577_v41  ;;  %v1583_v9 = vrot.slane %v3259_v51, 5 }
  0x40   : > { %v2566_v3 = vrot.slane %v3178_v42, 9  ;;  %v1581_v46 = vsel %vm3365_vm7, %v2565_v60, %v1580_v0  ;;  %v1582_v47 = vrot.slane %v1580_v0, 4  ;;  %v1587_v50 = vrot.slane %v3181_v43, 5 }
  0x41   : > { %v1590_v38 = vrot.slane %v3269_v55, 5  ;;  %v981_v39 = vshll.u32 %v3162_v35, 16  ;;  %v4012_v51 = vrot.slane %v3072_v5, 5  ;;  %v4013_v42 = vrot.slane %v3069_v4, 9 }
  0x42   : > { %v1597_v11 = vrot.slane %v3281_v32, 5  ;;  %v3471_v43 = vrot.slane %v940_v27, 4  ;;  %v1584_v55 = vsel %vm3365_vm7, %v1582_v47, %v1583_v9  ;;  %v1589_v40 = vrot.slane %v1587_v50, 4 }
  0x43   : > { %2759 = vmatmul.mubr.msk.bf16.gmra.mrb[20].mxu1 %vm326_vm1, %v3300_v44  ;;  %v1595_v44 = vsel %vm3365_vm7, %v4013_v42, %v4012_v51  ;;  %v4014_v37 = vmov %v4012_v51  ;;  %v3479_v4 = vcombine.low %v1581_v46, %v1584_v55  ;;  %v2568_v32 = vrot.slane %v3075_v6, 9 }
  0x44   : > { %2782 = vmatprep.mubr.msk.bf16.mxu1 %vm326_vm1, %v2527_v56  ;;  %v1596_v19 = vrot.slane %v4014_v37, 4  ;;  %v1588_v56 = vsel %vm3365_vm7, %v2566_v3, %v1587_v50  ;;  %v3485_v27 = vrot.slane %v954_v12, 4  ;;  %v1591_v54 = vsel %vm3365_vm7, %v1589_v40, %v1590_v38  ;;  %v4017_v37 = vld [vmem:[#allocation3_spill] sm:$0xff] }
  0x45   : > { %2777 = vmatmul.mubr.msk.bf16.gmra.mrb[20].mxu0 %vm326_vm1, %v2517_v57  ;;  %v1601_v57 = vrot.slane %v3082_v8, 5  ;;  %v1604_v13 = vrot.slane %v3320_v63, 5  ;;  %v978_v41 = vor.u32 %v3433_v14, %v3416_v25  ;;  %v3497_v60 = vcombine.low %v1588_v56, %v1591_v54  ;;  %v3514_v25 = vld [vmem:[%s3992_s1 + $0xa] sm:$0x3] }
  0x46   : > { %2800 = vmatprep.mubr.msk.bf16.mxu0 %vm326_vm1, %v3382_v28  ;;  %v1598_v5 = vsel %vm3365_vm7, %v1596_v19, %v1597_v11  ;;  %v964_v12 = vor.u32 %v3410_v49, %v3429_v1  ;;  %v3503_v0 = vrot.slane %v981_v39, 5  ;;  %v4015_v9 = vshrl.u32 %v3162_v35, 16 }
  0x47   : > { %v3492_v10 = vcombine.low %v1595_v44, %v1598_v5  ;;  %v1602_v6 = vsel %vm3365_vm7, %v2568_v32, %v1601_v57  ;;  %v1603_v8 = vrot.slane %v1601_v57, 4  ;;  %v2569_v63 = vrot.slane %v3129_v22, 9  ;;  %v3575_v32 = vld [vmem:[%s3066_s30 + $0x74] sm:$0x1] }
  0x48   : > { %v3507_v3 = vrot.slane %v4015_v9, 4  ;;  %v991_v46 = vshll.u32 %v3488_v21, 16  ;;  %v1608_v49 = vrot.slane %v3132_v23, 5  ;;  %v1611_v47 = vrot.slane %v3374_v7, 5  ;;  %v3543_v7 = vld [vmem:[%s3992_s1 + $0x10] sm:$0x3] }
  0x49   : > { %v1605_v14 = vsel %vm3365_vm7, %v1603_v8, %v1604_v13  ;;  %v946_v22 = vsel %vm3307_vm6, %v3471_v43, %v3395_v61  ;;  %v4016_v50 = vshrl.u32 %v3274_v36, 16  ;;  %v2570_v51 = vrot.slane %v3159_v34, 9 }
  0x4a   : > { %v3530_v39 = vcombine.low %v1602_v6, %v1605_v14  ;;  %v3538_v23 = vrot.slane %v1197_v62, 5  ;;  %v1610_v61 = vrot.slane %v1608_v49, 4  ;;  %v1615_v34 = vrot.slane %v3162_v35, 5 }
  0x4b   : > { %2783 = vmatmul.mubr.msk.bf16.vlgmr.msra.gmra.mrb[24].mxu1 %vm326_vm1, %v3382_v28  ;;  %v3528_v38 = vrot.slane %v4016_v50, 4  ;;  %v1609_v28 = vsel %vm3365_vm7, %v2569_v63, %v1608_v49  ;;  %v1618_v62 = vrot.slane %v3488_v21, 5  ;;  %v2588_v42 = vrot.slane %v3274_v36, 9  ;;  %v248_v36 = vld [vmem:[%s3066_s30 + $0x68] sm:$0x1] }
  0x4c   : > { %2817 = vmatpush3.bf16.msra.mxu1 %v3143_v26  ;;  %2786 = vmatprep.mubr.msk.bf16.mxu1 %vm326_vm1, %v3384_v29  ;;  %v3550_v26 = vrot.slane %v964_v12, 4  ;;  %v1821_v44 = vrot.slane %v3285_v17, 5  ;;  %v1203_v35 = vshll.u32 %v3285_v17, 16  ;;  %v1612_v19 = vsel %vm3365_vm7, %v1610_v61, %v1611_v47 }
  0x4d   : > { %2801 = vmatmul.mubr.msk.bf16.vlgmr.msra.gmra.mrb[24].mxu0 %vm326_vm1, %v3384_v29  ;;  %2898 = vmatprep.subr.msk.bf16.mxu1 %vm351_vm0, %v3514_v25  ;;  %v1616_v11 = vsel %vm3365_vm7, %v2570_v51, %v1615_v34  ;;  %v1617_v43 = vrot.slane %v1615_v34, 4  ;;  %v988_v55 = vor.u32 %v3507_v3, %v3503_v0  ;;  %v3570_v56 = vcombine.low %v1609_v28, %v1612_v19 }
  0x4e   : > { %2835 = vmatpush3.bf16.msra.mxu0 %v4017_v37  ;;  %2804 = vmatprep.mubr.msk.bf16.mxu0 %vm326_vm1, %v3391_v48  ;;  %v1822_v40 = vsel %vm3365_vm7, %v2588_v42, %v1821_v44  ;;  %v1823_v5 = vrot.slane %v1821_v44, 4  ;;  %v1824_v54 = vrot.slane %v248_v36, 5  ;;  %v2599_v13 = vrot.slane %v3333_v2, 9 }
  0x4f   : > { %2899 = vmatprep.subr.msk.bf16.mxu0 %vm351_vm0, %v3543_v7  ;;  %v1619_v57 = vsel %vm3365_vm7, %v1617_v43, %v1618_v62  ;;  %v1985_v6 = vrot.slane %v3336_v53, 5  ;;  %v1209_v8 = vrot.slane %v1207_v30, 4  ;;  %v1988_v9 = vrot.slane %v3575_v32, 5 }
  0x50   : > { %v3583_v12 = vcombine.low %v1616_v11, %v1619_v57  ;;  %v1205_v3 = vrot.slane %v1203_v35, 5  ;;  %v1825_v63 = vsel %vm3365_vm7, %v1823_v5, %v1824_v54  ;;  %v3603_v30 = vcombine.low %v936_v24, %v946_v22 }
  0x51   : > { %v3590_v14 = vsel %vm3365_vm7, %v2599_v13, %v1985_v6  ;;  %v1987_v49 = vrot.slane %v1985_v6, 4  ;;  %v3594_v47 = vcombine.low %v1822_v40, %v1825_v63  ;;  %v960_v17 = vsel %vm3307_vm6, %v3485_v27, %v3429_v1 }
  0x52   : > { %v979_v50 = vrot.slane %v978_v41, 4  ;;  %v2992_v28 = vmov 0.0   ;;  %v970_v59 = vsel %vm3307_vm6, %v3550_v26, %v3447_v20  ;;  %v989_v18 = vrot.slane %v988_v55, 4 }
  0x53   : > { %2787 = vmatmul.mubr.msk.bf16.gmra.mrb[28].mxu1 %vm326_vm1, %v3391_v48  ;;  %v3611_v51 = vsel %vm3365_vm7, %v1987_v49, %v1988_v9  ;;  %263 = vst.msk [vmem:[#allocation2 + $0x50] sm:$0xff] %vm252_vm8, %v2992_v28  ;;  %253 = vst.msk [vmem:[#allocation2] sm:$0xff] %vm252_vm8, %v2992_v28  ;;  %v993_v33 = vrot.slane %v991_v46, 5  ;;  %v1200_v1 = vor.u32 %v3538_v23, %v3528_v38  ;;  %v1213_v41 = vshll.u32 %v248_v36, 16 }
  0x54   : > { %2790 = vmatprep.mubr.msk.bf16.mxu1 %vm326_vm1, %v3393_v45  ;;  %254 = vst.msk [vmem:[#allocation2 + $0x8] sm:$0xff] %vm252_vm8, %v2992_v28  ;;  %255 = vst.msk [vmem:[#allocation2 + $0x10] sm:$0xff] %vm252_vm8, %v2992_v28  ;;  %v2601_v24 = vcombine.low %v3590_v14, %v3611_v51  ;;  %v1210_v27 = vor.u32 %v1209_v8, %v1205_v3  ;;  %v2533_v22 = vcombine.low %v960_v17, %v970_v59 }
  0x55   : > { %256 = vst.msk [vmem:[#allocation2 + $0x18] sm:$0xff] %vm252_vm8, %v2992_v28  ;;  %257 = vst.msk [vmem:[#allocation2 + $0x20] sm:$0xff] %vm252_vm8, %v2992_v28  ;;  %2805 = vmatmul.mubr.msk.bf16.gmra.mrb[28].mxu0 %vm326_vm1, %v3393_v45  ;;  %v984_v20 = vsel %vm3307_vm6, %v979_v50, %v3503_v0  ;;  %v994_v21 = vsel %vm3307_vm6, %v989_v18, %v993_v33  ;;  %v1201_v46 = vrot.slane %v1200_v1, 4  ;;  %v1215_v34 = vrot.slane %v1213_v41, 5 }
  0x56   : > { %258 = vst.msk [vmem:[#allocation2 + $0x28] sm:$0xff] %vm252_vm8, %v2992_v28  ;;  %259 = vst.msk [vmem:[#allocation2 + $0x30] sm:$0xff] %vm252_vm8, %v2992_v28  ;;  %2808 = vmatprep.mubr.msk.bf16.mxu0 %vm326_vm1, %v3603_v30  ;;  %v1211_v61 = vrot.slane %v1210_v27, 4  ;;  %v2534_v26 = vcombine.low %v984_v20, %v994_v21  ;;  %v1851_v62 = vsel %vm351_vm0, %v3514_v25, 0  ;;  %v2015_v42 = vsel %vm351_vm0, %v3543_v7, 0 }
  0x57   : > { %260 = vst.msk [vmem:[#allocation2 + $0x38] sm:$0xff] %vm252_vm8, %v2992_v28  ;;  %261 = vst.msk [vmem:[#allocation2 + $0x40] sm:$0xff] %vm252_vm8, %v2992_v28  ;;  %v1206_v38 = vsel %vm3307_vm6, %v1201_v46, %v1205_v3  ;;  %v1374_v44 = vshrl.u32 %v3333_v2, 16  ;;  %v1387_v37 = vshrl.u32 %v3336_v53, 16  ;;  %v1383_v58 = vshll.u32 %v3336_v53, 16 }
  0x58   : > { %262 = vst.msk [vmem:[#allocation2 + $0x48] sm:$0xff] %vm252_vm8, %v2992_v28  ;;  %264 = vst.msk [vmem:[#allocation2 + $0x58] sm:$0xff] %vm252_vm8, %v2992_v28  ;;  %v1216_v0 = vsel %vm3307_vm6, %v1211_v61, %v1215_v34  ;;  %v1393_v53 = vshll.u32 %v3575_v32, 16 }
  0x59   : > { %265 = vst.msk [vmem:[#allocation2 + $0x60] sm:$0xff] %vm252_vm8, %v2992_v28  ;;  %266 = vst.msk [vmem:[#allocation2 + $0x68] sm:$0xff] %vm252_vm8, %v2992_v28  ;;  %v2544_v23 = vcombine.low %v1206_v38, %v1216_v0  ;;  %v1389_v25 = vrot.slane %v1387_v37, 4 }
  0x5a   : > { %267 = vst.msk [vmem:[#allocation2 + $0x70] sm:$0xff] %vm252_vm8, %v2992_v28  ;;  %268 = vst.msk [vmem:[#allocation2 + $0x78] sm:$0xff] %vm252_vm8, %v2992_v28  ;;  %v1395_v19 = vrot.slane %v1393_v53, 5  ;;  %v279_v52 = vld [vmem:[#allocation2 + $0x50] sm:$0xff]  ;;  %v269_v54 = vld [vmem:[#allocation2] sm:$0xff] }
  0x5b   : > { %2791 = vmatmul.mubr.msk.bf16.gmra.mrb[32].mxu1 %vm326_vm1, %v3603_v30  ;;  %v271_v5 = vld [vmem:[#allocation2 + $0x10] sm:$0xff]  ;;  %v270_v3 = vld [vmem:[#allocation2 + $0x8] sm:$0xff] }
  0x5c   : > { %2794 = vmatprep.mubr.msk.bf16.mxu1 %vm326_vm1, %v2533_v22  ;;  %v272_v8 = vld [vmem:[#allocation2 + $0x18] sm:$0xff]  ;;  %v273_v1 = vld [vmem:[#allocation2 + $0x20] sm:$0xff] }
  0x5d   : > { %2809 = vmatmul.mubr.msk.bf16.gmra.mrb[32].mxu0 %vm326_vm1, %v2533_v22  ;;  %v275_v59 = vld [vmem:[#allocation2 + $0x30] sm:$0xff] }
  0x5e   : > { %2812 = vmatprep.mubr.msk.bf16.mxu0 %vm326_vm1, %v2534_v26  ;;  %v276_v20 = vld [vmem:[#allocation2 + $0x38] sm:$0xff] }
  0x5f   : > { %v278_v36 = vld [vmem:[#allocation2 + $0x48] sm:$0xff] }
  0x60   : > { %v281_v50 = vld [vmem:[#allocation2 + $0x60] sm:$0xff] }
  0x61   : > { %v283_v17 = vld [vmem:[#allocation2 + $0x70] sm:$0xff]  ;;  %v284_v28 = vld [vmem:[#allocation2 + $0x78] sm:$0xff] }
  0x63   : > { %2795 = vmatmul.mubr.msk.bf16.gmra.mrb[36].mxu1 %vm326_vm1, %v2534_v26 }
  0x64   : > { %2818 = vmatprep.mubr.msk.bf16.mxu1 %vm326_vm1, %v3384_v29  ;;  %v1377_v29 = vshll.u32 %v3333_v2, 16 }
  0x65   : > { %2813 = vmatmul.mubr.msk.bf16.gmra.mrb[36].mxu0 %vm326_vm1, %v2544_v23 }
  0x66   : > { %2836 = vmatprep.mubr.msk.bf16.mxu0 %vm326_vm1, %v2572_v16  ;;  %v1379_v15 = vrot.slane %v1377_v29, 5  ;;  %v1385_v16 = vrot.slane %v1383_v58, 5 }
  0x6b   : > { %2819 = vmatmul.mubr.msk.bf16.vlgmr.msra.gmra.mrb[40].mxu1 %vm326_vm1, %v3391_v48  ;;  %v1376_v48 = vrot.slane %v1374_v44, 4 }
  0x6c   : > { %2853 = vmatpush3.bf16.msra.mxu1 %v1851_v62  ;;  %2822 = vmatprep.mubr.msk.bf16.mxu1 %vm326_vm1, %v3393_v45  ;;  %v1390_v45 = vor.u32 %v1389_v25, %v1385_v16 }
  0x6d   : > { %2837 = vmatmul.mubr.msk.bf16.vlgmr.msra.gmra.mrb[40].mxu0 %vm326_vm1, %v3449_v31  ;;  %v1380_v2 = vor.u32 %v1379_v15, %v1376_v48 }
  0x6e   : > { %2871 = vmatpush3.bf16.msra.mxu0 %v2015_v42  ;;  %2840 = vmatprep.mubr.msk.bf16.mxu0 %vm326_vm1, %v3479_v4  ;;  %v1391_v35 = vrot.slane %v1390_v45, 4 }
  0x6f   : > { %v1381_v7 = vrot.slane %v1380_v2, 4 }
  0x70   : > { %v1396_v43 = vsel %vm3307_vm6, %v1391_v35, %v1395_v19 }
  0x71   : > { %v1386_v11 = vsel %vm3307_vm6, %v1381_v7, %v1385_v16 }
  0x72   : > { %v2554_v55 = vcombine.low %v1386_v11, %v1396_v43 }
  0x73   : > { %2823 = vmatmul.mubr.msk.bf16.gmra.mrb[44].mxu1 %vm326_vm1, %v3603_v30 }
  0x74   : > { %2826 = vmatprep.mubr.msk.bf16.mxu1 %vm326_vm1, %v2533_v22 }
  0x75   : > { %2841 = vmatmul.mubr.msk.bf16.gmra.mrb[44].mxu0 %vm326_vm1, %v3497_v60 }
  0x76   : > { %2844 = vmatprep.mubr.msk.bf16.mxu0 %vm326_vm1, %v3492_v10 }
  0x7b   : > { %2827 = vmatmul.mubr.msk.bf16.gmra.mrb[48].mxu1 %vm326_vm1, %v2534_v26  ;;  %v274_v26 = vld [vmem:[#allocation2 + $0x28] sm:$0xff] }
  0x7c   : > { %2830 = vmatprep.mubr.msk.bf16.mxu1 %vm326_vm1, %v2544_v23 }
  0x7d   : > { %2845 = vmatmul.mubr.msk.bf16.gmra.mrb[48].mxu0 %vm326_vm1, %v3530_v39 }
  0x7e   : > { %2848 = vmatprep.mubr.msk.bf16.mxu0 %vm326_vm1, %v3570_v56 }
  0x83   : > { %2831 = vmatmul.mubr.msk.bf16.gmra.mrb[52].mxu1 %vm326_vm1, %v2554_v55 }
  0x84   : > { %2854 = vmatprep.mubr.msk.bf16.mxu1 %vm326_vm1, %v3449_v31  ;;  %v277_v31 = vld [vmem:[#allocation2 + $0x40] sm:$0xff] }
  0x85   : > { %2849 = vmatmul.mubr.msk.bf16.gmra.mrb[52].mxu0 %vm326_vm1, %v3583_v12 }
  0x86   : > { %2872 = vmatprep.mubr.msk.bf16.mxu0 %vm326_vm1, %v3479_v4 }
  0x8b   : > { %2855 = vmatmul.mubr.msk.bf16.vlgmr.msra.gmra.mrb[56].mxu1 %vm326_vm1, %v3479_v4 }
  0x8c   : > { %2858 = vmatprep.mubr.msk.bf16.mxu1 %vm326_vm1, %v3497_v60 }
  0x8d   : > { %2873 = vmatmul.mubr.msk.bf16.vlgmr.msra.gmra.mrb[56].mxu0 %vm326_vm1, %v3497_v60 }
  0x8e   : > { %2876 = vmatprep.mubr.msk.bf16.mxu0 %vm326_vm1, %v3492_v10 }
  0x93   : > { %2859 = vmatmul.mubr.msk.bf16.gmra.mrb[60].mxu1 %vm326_vm1, %v3492_v10  ;;  %v280_v10 = vld [vmem:[#allocation2 + $0x58] sm:$0xff] }
  0x94   : > { %2862 = vmatprep.mubr.msk.bf16.mxu1 %vm326_vm1, %v3530_v39 }
  0x95   : > { %2877 = vmatmul.mubr.msk.bf16.gmra.mrb[60].mxu0 %vm326_vm1, %v3530_v39 }
  0x96   : > { %2880 = vmatprep.mubr.msk.bf16.mxu0 %vm326_vm1, %v3570_v56 }
  0x9b   : > { %2863 = vmatmul.mubr.msk.bf16.gmra.mrb[64].mxu1 %vm326_vm1, %v3570_v56 }
  0x9c   : > { %2866 = vmatprep.mubr.msk.bf16.mxu1 %vm326_vm1, %v3583_v12 }
  0x9d   : > { %2881 = vmatmul.mubr.msk.bf16.gmra.mrb[64].mxu0 %vm326_vm1, %v3583_v12 }
  0x9e   : > { %2884 = vmatprep.mubr.msk.bf16.mxu0 %vm326_vm1, %v3594_v47 }
  0xa3   : > { %2867 = vmatmul.mubr.msk.bf16.gmra.mrb[68].mxu1 %vm326_vm1, %v3594_v47 }
  0xa5   : > { %2885 = vmatmul.mubr.msk.bf16.gmra.mrb[68].mxu0 %vm326_vm1, %v2601_v24  ;;  %v282_v24 = vld [vmem:[#allocation2 + $0x68] sm:$0xff] }
  0xee   : > { %v2738_v4 = vpop.f32.mrb[0].mxu1 }
  0xef   : > { %v462_v60 = vadd.f32 %v2738_v4, %v279_v52  ;;  %v421_v39 = vpop.f32.mrb[1].mxu1 }
  0xf0   : > { %v460_v56 = vadd.f32 %v421_v39, %v277_v31  ;;  %v2739_v40 = vpop.f32.mrb[2].mxu1  ;;  %v2730_v6 = vpop.f32.mrb[0].mxu0 }
  0xf1   : > { %478 = vst.msk [vmem:[#allocation2 + $0x50] sm:$0xff] %vm252_vm8, %v462_v60  ;;  %v463_v32 = vadd.f32 %v2739_v40, %v280_v10  ;;  %v424_v57 = vpop.f32.mrb[3].mxu1  ;;  %v454_v12 = vadd.f32 %v2730_v6, %v271_v5  ;;  %v389_v9 = vpop.f32.mrb[1].mxu0 }
  0xf2   : > { %476 = vst.msk [vmem:[#allocation2 + $0x40] sm:$0xff] %vm252_vm8, %v460_v56  ;;  %v461_v13 = vadd.f32 %v424_v57, %v278_v36  ;;  %v452_v63 = vadd.f32 %v389_v9, %v269_v54  ;;  %v2731_v14 = vpop.f32.mrb[2].mxu0 }
  0xf3   : > { %479 = vst.msk [vmem:[#allocation2 + $0x58] sm:$0xff] %vm252_vm8, %v463_v32  ;;  %470 = vst.msk [vmem:[#allocation2 + $0x10] sm:$0xff] %vm252_vm8, %v454_v12  ;;  %v455_v49 = vadd.f32 %v2731_v14, %v272_v8  ;;  %v392_v47 = vpop.f32.mrb[3].mxu0 }
  0xf4   : > { %477 = vst.msk [vmem:[#allocation2 + $0x48] sm:$0xff] %vm252_vm8, %v461_v13  ;;  %468 = vst.msk [vmem:[#allocation2] sm:$0xff] %vm252_vm8, %v452_v63  ;;  %v453_v30 = vadd.f32 %v392_v47, %v270_v3 }
  0xf5   : > { %471 = vst.msk [vmem:[#allocation2 + $0x18] sm:$0xff] %vm252_vm8, %v455_v49 }
  0xf6   : > { %469 = vst.msk [vmem:[#allocation2 + $0x8] sm:$0xff] %vm252_vm8, %v453_v30  ;;  %v2742_v51 = vpop.f32.mrb[4].mxu1 }
  0xf7   : > { %v466_v18 = vadd.f32 %v2742_v51, %v283_v17  ;;  %v437_v33 = vpop.f32.mrb[5].mxu1 }
  0xf8   : > { %v464_v27 = vadd.f32 %v437_v33, %v281_v50  ;;  %v2743_v41 = vpop.f32.mrb[6].mxu1  ;;  %v2734_v22 = vpop.f32.mrb[4].mxu0  ;;  %v494_v17 = vld [vmem:[#allocation2 + $0x50] sm:$0xff] }
  0xf9   : > { %482 = vst.msk [vmem:[#allocation2 + $0x70] sm:$0xff] %vm252_vm8, %v466_v18  ;;  %v467_v21 = vadd.f32 %v2743_v41, %v284_v28  ;;  %v440_v46 = vpop.f32.mrb[7].mxu1  ;;  %v458_v61 = vadd.f32 %v2734_v22, %v275_v59  ;;  %v405_v34 = vpop.f32.mrb[5].mxu0  ;;  %v492_v28 = vld [vmem:[#allocation2 + $0x40] sm:$0xff] }
  0xfa   : > { %480 = vst.msk [vmem:[#allocation2 + $0x60] sm:$0xff] %vm252_vm8, %v464_v27  ;;  %v465_v38 = vadd.f32 %v440_v46, %v282_v24  ;;  %v456_v0 = vadd.f32 %v405_v34, %v273_v1  ;;  %v2735_v23 = vpop.f32.mrb[6].mxu0  ;;  %v486_v44 = vld [vmem:[#allocation2 + $0x10] sm:$0xff]  ;;  %v495_v24 = vld [vmem:[#allocation2 + $0x58] sm:$0xff] }
  0xfb   : > { %483 = vst.msk [vmem:[#allocation2 + $0x78] sm:$0xff] %vm252_vm8, %v467_v21  ;;  %474 = vst.msk [vmem:[#allocation2 + $0x30] sm:$0xff] %vm252_vm8, %v458_v61  ;;  %v459_v62 = vadd.f32 %v2735_v23, %v276_v20  ;;  %v408_v42 = vpop.f32.mrb[7].mxu0  ;;  %v484_v37 = vld [vmem:[#allocation2] sm:$0xff]  ;;  %v493_v21 = vld [vmem:[#allocation2 + $0x48] sm:$0xff] }
  0xfc   : > { %481 = vst.msk [vmem:[#allocation2 + $0x68] sm:$0xff] %vm252_vm8, %v465_v38  ;;  %472 = vst.msk [vmem:[#allocation2 + $0x20] sm:$0xff] %vm252_vm8, %v456_v0  ;;  %v457_v29 = vadd.f32 %v408_v42, %v274_v26  ;;  %v487_v48 = vld [vmem:[#allocation2 + $0x18] sm:$0xff] }
  0xfd   : > { %475 = vst.msk [vmem:[#allocation2 + $0x38] sm:$0xff] %vm252_vm8, %v459_v62  ;;  %v485_v25 = vld [vmem:[#allocation2 + $0x8] sm:$0xff] }
  0xfe   : > { %v2748_v58 = vpop.f32.mrb[8].mxu1  ;;  %473 = vst.msk [vmem:[#allocation2 + $0x28] sm:$0xff] %vm252_vm8, %v457_v29 }
  0xff   : > { %v612_v15 = vadd.f32 %v2748_v58, %v486_v44  ;;  %v547_v16 = vpop.f32.mrb[9].mxu1 }
 0x100   : > { %v610_v2 = vadd.f32 %v547_v16, %v484_v37  ;;  %v2749_v45 = vpop.f32.mrb[10].mxu1  ;;  %v2766_v53 = vpop.f32.mrb[8].mxu0  ;;  %v498_v29 = vld [vmem:[#allocation2 + $0x70] sm:$0xff] }
 0x101   : > { %628 = vst.msk [vmem:[#allocation2 + $0x10] sm:$0xff] %vm252_vm8, %v612_v15  ;;  %v613_v7 = vadd.f32 %v2749_v45, %v487_v48  ;;  %v550_v35 = vpop.f32.mrb[11].mxu1  ;;  %v705_v19 = vpop.f32.mrb[9].mxu0  ;;  %v496_v48 = vld [vmem:[#allocation2 + $0x60] sm:$0xff] }
 0x102   : > { %626 = vst.msk [vmem:[#allocation2] sm:$0xff] %vm252_vm8, %v610_v2  ;;  %v611_v11 = vadd.f32 %v550_v35, %v485_v25  ;;  %v2767_v43 = vpop.f32.mrb[10].mxu0  ;;  %v490_v52 = vld [vmem:[#allocation2 + $0x30] sm:$0xff]  ;;  %v499_v2 = vld [vmem:[#allocation2 + $0x78] sm:$0xff] }
 0x103   : > { %629 = vst.msk [vmem:[#allocation2 + $0x18] sm:$0xff] %vm252_vm8, %v613_v7  ;;  %v708_v55 = vpop.f32.mrb[11].mxu0  ;;  %v488_v31 = vld [vmem:[#allocation2 + $0x20] sm:$0xff] }
 0x104   : > { %627 = vst.msk [vmem:[#allocation2 + $0x8] sm:$0xff] %vm252_vm8, %v611_v11  ;;  %v491_v10 = vld [vmem:[#allocation2 + $0x38] sm:$0xff]  ;;  %v497_v11 = vld [vmem:[#allocation2 + $0x68] sm:$0xff] }
 0x105   : > { %v489_v36 = vld [vmem:[#allocation2 + $0x28] sm:$0xff] }
 0x106   : > { %v2752_v4 = vpop.f32.mrb[12].mxu1 }
 0x107   : > { %v616_v60 = vadd.f32 %v2752_v4, %v490_v52  ;;  %v563_v39 = vpop.f32.mrb[13].mxu1 }
 0x108   : > { %v644_v56 = vld [vmem:[#allocation2 + $0x10] sm:$0xff]  ;;  %v614_v40 = vadd.f32 %v563_v39, %v488_v31  ;;  %v2753_v5 = vpop.f32.mrb[14].mxu1  ;;  %v2770_v32 = vpop.f32.mrb[12].mxu0 }
 0x109   : > { %v770_v57 = vadd.f32 %v2766_v53, %v644_v56  ;;  %632 = vst.msk [vmem:[#allocation2 + $0x30] sm:$0xff] %vm252_vm8, %v616_v60  ;;  %v642_v54 = vld [vmem:[#allocation2] sm:$0xff]  ;;  %v617_v13 = vadd.f32 %v2753_v5, %v491_v10  ;;  %v566_v6 = vpop.f32.mrb[15].mxu1  ;;  %v721_v8 = vpop.f32.mrb[13].mxu0 }
 0x10a   : > { %v768_v12 = vadd.f32 %v705_v19, %v642_v54  ;;  %630 = vst.msk [vmem:[#allocation2 + $0x20] sm:$0xff] %vm252_vm8, %v614_v40  ;;  %v645_v9 = vld [vmem:[#allocation2 + $0x18] sm:$0xff]  ;;  %v615_v3 = vadd.f32 %v566_v6, %v489_v36  ;;  %v2771_v63 = vpop.f32.mrb[14].mxu0 }
 0x10b   : > { %786 = vst.msk [vmem:[#allocation2 + $0x10] sm:$0xff] %vm252_vm8, %v770_v57  ;;  %v771_v14 = vadd.f32 %v2767_v43, %v645_v9  ;;  %633 = vst.msk [vmem:[#allocation2 + $0x38] sm:$0xff] %vm252_vm8, %v617_v13  ;;  %v643_v49 = vld [vmem:[#allocation2 + $0x8] sm:$0xff]  ;;  %v724_v47 = vpop.f32.mrb[15].mxu0 }
 0x10c   : > { %784 = vst.msk [vmem:[#allocation2] sm:$0xff] %vm252_vm8, %v768_v12  ;;  %v769_v30 = vadd.f32 %v708_v55, %v643_v49  ;;  %631 = vst.msk [vmem:[#allocation2 + $0x28] sm:$0xff] %vm252_vm8, %v615_v3 }
 0x10d   : > { %787 = vst.msk [vmem:[#allocation2 + $0x18] sm:$0xff] %vm252_vm8, %v771_v14 }
 0x10e   : > { %785 = vst.msk [vmem:[#allocation2 + $0x8] sm:$0xff] %vm252_vm8, %v769_v30  ;;  %v2756_v50 = vpop.f32.mrb[16].mxu1 }
 0x10f   : > { %v620_v51 = vadd.f32 %v2756_v50, %v494_v17  ;;  %v579_v59 = vpop.f32.mrb[17].mxu1 }
 0x110   : > { %v648_v18 = vld [vmem:[#allocation2 + $0x30] sm:$0xff]  ;;  %v618_v33 = vadd.f32 %v579_v59, %v492_v28  ;;  %v2757_v1 = vpop.f32.mrb[18].mxu1  ;;  %v2774_v27 = vpop.f32.mrb[16].mxu0 }
 0x111   : > { %v774_v41 = vadd.f32 %v2770_v32, %v648_v18  ;;  %636 = vst.msk [vmem:[#allocation2 + $0x50] sm:$0xff] %vm252_vm8, %v620_v51  ;;  %v646_v22 = vld [vmem:[#allocation2 + $0x20] sm:$0xff]  ;;  %v621_v20 = vadd.f32 %v2757_v1, %v495_v24  ;;  %v582_v46 = vpop.f32.mrb[19].mxu1  ;;  %v737_v61 = vpop.f32.mrb[17].mxu0 }
 0x112   : > { %v772_v34 = vadd.f32 %v721_v8, %v646_v22  ;;  %634 = vst.msk [vmem:[#allocation2 + $0x40] sm:$0xff] %vm252_vm8, %v618_v33  ;;  %v649_v26 = vld [vmem:[#allocation2 + $0x38] sm:$0xff]  ;;  %v619_v38 = vadd.f32 %v582_v46, %v493_v21  ;;  %v2775_v0 = vpop.f32.mrb[18].mxu0  ;;  %v997_v40 = vld [vmem:[#allocation2 + $0x10] sm:$0xff] }
 0x113   : > { %790 = vst.msk [vmem:[#allocation2 + $0x30] sm:$0xff] %vm252_vm8, %v774_v41  ;;  %v775_v23 = vadd.f32 %v2771_v63, %v649_v26  ;;  %637 = vst.msk [vmem:[#allocation2 + $0x58] sm:$0xff] %vm252_vm8, %v621_v20  ;;  %v647_v62 = vld [vmem:[#allocation2 + $0x28] sm:$0xff]  ;;  %v740_v42 = vpop.f32.mrb[19].mxu0  ;;  %v995_v57 = vld [vmem:[#allocation2] sm:$0xff] }
 0x114   : > { %788 = vst.msk [vmem:[#allocation2 + $0x20] sm:$0xff] %vm252_vm8, %v772_v34  ;;  %v773_v44 = vadd.f32 %v724_v47, %v647_v62  ;;  %635 = vst.msk [vmem:[#allocation2 + $0x48] sm:$0xff] %vm252_vm8, %v619_v38  ;;  %v998_v8 = vld [vmem:[#allocation2 + $0x18] sm:$0xff] }
 0x115   : > { %791 = vst.msk [vmem:[#allocation2 + $0x38] sm:$0xff] %vm252_vm8, %v775_v23  ;;  %v996_v49 = vld [vmem:[#allocation2 + $0x8] sm:$0xff] }
 0x116   : > { %789 = vst.msk [vmem:[#allocation2 + $0x28] sm:$0xff] %vm252_vm8, %v773_v44  ;;  %v2760_v37 = vpop.f32.mrb[20].mxu1 }
 0x117   : > { %v624_v58 = vadd.f32 %v2760_v37, %v498_v29  ;;  %v595_v15 = vpop.f32.mrb[21].mxu1 }
 0x118   : > { %v652_v16 = vld [vmem:[#allocation2 + $0x50] sm:$0xff]  ;;  %v622_v25 = vadd.f32 %v595_v15, %v496_v48  ;;  %v2761_v45 = vpop.f32.mrb[22].mxu1  ;;  %v2778_v53 = vpop.f32.mrb[20].mxu0 }
 0x119   : > { %v778_v7 = vadd.f32 %v2774_v27, %v652_v16  ;;  %640 = vst.msk [vmem:[#allocation2 + $0x70] sm:$0xff] %vm252_vm8, %v624_v58  ;;  %v650_v35 = vld [vmem:[#allocation2 + $0x40] sm:$0xff]  ;;  %v625_v19 = vadd.f32 %v2761_v45, %v499_v2  ;;  %v598_v43 = vpop.f32.mrb[23].mxu1  ;;  %v753_v55 = vpop.f32.mrb[21].mxu0 }
 0x11a   : > { %v776_v52 = vadd.f32 %v737_v61, %v650_v35  ;;  %638 = vst.msk [vmem:[#allocation2 + $0x60] sm:$0xff] %vm252_vm8, %v622_v25  ;;  %v653_v31 = vld [vmem:[#allocation2 + $0x58] sm:$0xff]  ;;  %v623_v4 = vadd.f32 %v598_v43, %v497_v11  ;;  %v2779_v10 = vpop.f32.mrb[22].mxu0  ;;  %v1001_v1 = vld [vmem:[#allocation2 + $0x30] sm:$0xff] }
 0x11b   : > { %794 = vst.msk [vmem:[#allocation2 + $0x50] sm:$0xff] %vm252_vm8, %v778_v7  ;;  %v779_v60 = vadd.f32 %v2775_v0, %v653_v31  ;;  %641 = vst.msk [vmem:[#allocation2 + $0x78] sm:$0xff] %vm252_vm8, %v625_v19  ;;  %v651_v39 = vld [vmem:[#allocation2 + $0x48] sm:$0xff]  ;;  %v756_v36 = vpop.f32.mrb[23].mxu0  ;;  %v999_v22 = vld [vmem:[#allocation2 + $0x20] sm:$0xff] }
 0x11c   : > { %792 = vst.msk [vmem:[#allocation2 + $0x40] sm:$0xff] %vm252_vm8, %v776_v52  ;;  %v777_v56 = vadd.f32 %v740_v42, %v651_v39  ;;  %639 = vst.msk [vmem:[#allocation2 + $0x68] sm:$0xff] %vm252_vm8, %v623_v4  ;;  %v1002_v61 = vld [vmem:[#allocation2 + $0x38] sm:$0xff] }
 0x11d   : > { %795 = vst.msk [vmem:[#allocation2 + $0x58] sm:$0xff] %vm252_vm8, %v779_v60  ;;  %v1000_v62 = vld [vmem:[#allocation2 + $0x28] sm:$0xff] }
 0x11e   : > { %793 = vst.msk [vmem:[#allocation2 + $0x48] sm:$0xff] %vm252_vm8, %v777_v56  ;;  %v2784_v5 = vpop.f32.mrb[24].mxu1 }
 0x11f   : > { %v1163_v32 = vadd.f32 %v2784_v5, %v997_v40  ;;  %v1098_v54 = vpop.f32.mrb[25].mxu1 }
 0x120   : > { %v656_v13 = vld [vmem:[#allocation2 + $0x70] sm:$0xff]  ;;  %v1161_v6 = vadd.f32 %v1098_v54, %v995_v57  ;;  %v2785_v12 = vpop.f32.mrb[26].mxu1  ;;  %v2802_v9 = vpop.f32.mrb[24].mxu0 }
 0x121   : > { %v782_v3 = vadd.f32 %v2778_v53, %v656_v13  ;;  %v654_v63 = vld [vmem:[#allocation2 + $0x60] sm:$0xff]  ;;  %1179 = vst.msk [vmem:[#allocation2 + $0x10] sm:$0xff] %vm252_vm8, %v1163_v32  ;;  %v1164_v14 = vadd.f32 %v2785_v12, %v998_v8  ;;  %v1101_v47 = vpop.f32.mrb[27].mxu1  ;;  %v1278_v30 = vpop.f32.mrb[25].mxu0 }
 0x122   : > { %v780_v17 = vadd.f32 %v753_v55, %v654_v63  ;;  %v657_v50 = vld [vmem:[#allocation2 + $0x78] sm:$0xff]  ;;  %1177 = vst.msk [vmem:[#allocation2] sm:$0xff] %vm252_vm8, %v1161_v6  ;;  %v1162_v51 = vadd.f32 %v1101_v47, %v996_v49  ;;  %v2803_v28 = vpop.f32.mrb[26].mxu0  ;;  %v1005_v45 = vld [vmem:[#allocation2 + $0x50] sm:$0xff] }
 0x123   : > { %798 = vst.msk [vmem:[#allocation2 + $0x70] sm:$0xff] %vm252_vm8, %v782_v3  ;;  %v783_v59 = vadd.f32 %v2779_v10, %v657_v50  ;;  %v655_v18 = vld [vmem:[#allocation2 + $0x68] sm:$0xff]  ;;  %1180 = vst.msk [vmem:[#allocation2 + $0x18] sm:$0xff] %vm252_vm8, %v1164_v14  ;;  %v1281_v33 = vpop.f32.mrb[27].mxu0  ;;  %v1003_v35 = vld [vmem:[#allocation2 + $0x40] sm:$0xff] }
 0x124   : > { %796 = vst.msk [vmem:[#allocation2 + $0x60] sm:$0xff] %vm252_vm8, %v780_v17  ;;  %v781_v24 = vadd.f32 %v756_v36, %v655_v18  ;;  %1178 = vst.msk [vmem:[#allocation2 + $0x8] sm:$0xff] %vm252_vm8, %v1162_v51  ;;  %v1006_v55 = vld [vmem:[#allocation2 + $0x58] sm:$0xff] }
 0x125   : > { %799 = vst.msk [vmem:[#allocation2 + $0x78] sm:$0xff] %vm252_vm8, %v783_v59  ;;  %v1004_v39 = vld [vmem:[#allocation2 + $0x48] sm:$0xff] }
 0x126   : > { %797 = vst.msk [vmem:[#allocation2 + $0x68] sm:$0xff] %vm252_vm8, %v781_v24  ;;  %v2788_v27 = vpop.f32.mrb[28].mxu1 }
 0x127   : > { %v1167_v41 = vadd.f32 %v2788_v27, %v1001_v1  ;;  %v1114_v20 = vpop.f32.mrb[29].mxu1 }
 0x128   : > { %v1219_v21 = vld [vmem:[#allocation2 + $0x10] sm:$0xff]  ;;  %v1165_v46 = vadd.f32 %v1114_v20, %v999_v22  ;;  %v2789_v34 = vpop.f32.mrb[30].mxu1  ;;  %v2806_v26 = vpop.f32.mrb[28].mxu0 }
 0x129   : > { %v1343_v38 = vadd.f32 %v2802_v9, %v1219_v21  ;;  %1183 = vst.msk [vmem:[#allocation2 + $0x30] sm:$0xff] %vm252_vm8, %v1167_v41  ;;  %v1217_v0 = vld [vmem:[#allocation2] sm:$0xff]  ;;  %v1168_v23 = vadd.f32 %v2789_v34, %v1002_v61  ;;  %v1117_v42 = vpop.f32.mrb[31].mxu1  ;;  %v1294_v44 = vpop.f32.mrb[29].mxu0 }
 0x12a   : > { %v1341_v29 = vadd.f32 %v1278_v30, %v1217_v0  ;;  %1181 = vst.msk [vmem:[#allocation2 + $0x20] sm:$0xff] %vm252_vm8, %v1165_v46  ;;  %v1220_v37 = vld [vmem:[#allocation2 + $0x18] sm:$0xff]  ;;  %v1166_v58 = vadd.f32 %v1117_v42, %v1000_v62  ;;  %v2807_v48 = vpop.f32.mrb[30].mxu0  ;;  %v1009_v12 = vld [vmem:[#allocation2 + $0x70] sm:$0xff] }
 0x12b   : > { %1359 = vst.msk [vmem:[#allocation2 + $0x10] sm:$0xff] %vm252_vm8, %v1343_v38  ;;  %v1344_v15 = vadd.f32 %v2803_v28, %v1220_v37  ;;  %1184 = vst.msk [vmem:[#allocation2 + $0x38] sm:$0xff] %vm252_vm8, %v1168_v23  ;;  %v1218_v16 = vld [vmem:[#allocation2 + $0x8] sm:$0xff]  ;;  %v1297_v25 = vpop.f32.mrb[31].mxu0  ;;  %v1007_v63 = vld [vmem:[#allocation2 + $0x60] sm:$0xff] }
 0x12c   : > { %1357 = vst.msk [vmem:[#allocation2] sm:$0xff] %vm252_vm8, %v1341_v29  ;;  %v1342_v2 = vadd.f32 %v1281_v33, %v1218_v16  ;;  %1182 = vst.msk [vmem:[#allocation2 + $0x28] sm:$0xff] %vm252_vm8, %v1166_v58  ;;  %v1010_v30 = vld [vmem:[#allocation2 + $0x78] sm:$0xff] }
 0x12d   : > { %1360 = vst.msk [vmem:[#allocation2 + $0x18] sm:$0xff] %vm252_vm8, %v1344_v15  ;;  %v1008_v18 = vld [vmem:[#allocation2 + $0x68] sm:$0xff] }
 0x12e   : > { %1358 = vst.msk [vmem:[#allocation2 + $0x8] sm:$0xff] %vm252_vm8, %v1342_v2  ;;  %v2792_v53 = vpop.f32.mrb[32].mxu1 }
 0x12f   : > { %v1171_v7 = vadd.f32 %v2792_v53, %v1005_v45  ;;  %v1130_v19 = vpop.f32.mrb[33].mxu1 }
 0x130   : > { %v1223_v11 = vld [vmem:[#allocation2 + $0x30] sm:$0xff]  ;;  %v1169_v43 = vadd.f32 %v1130_v19, %v1003_v35  ;;  %v2793_v52 = vpop.f32.mrb[34].mxu1  ;;  %v2810_v31 = vpop.f32.mrb[32].mxu0 }
 0x131   : > { %v1347_v4 = vadd.f32 %v2806_v26, %v1223_v11  ;;  %1187 = vst.msk [vmem:[#allocation2 + $0x50] sm:$0xff] %vm252_vm8, %v1171_v7  ;;  %v1221_v10 = vld [vmem:[#allocation2 + $0x20] sm:$0xff]  ;;  %v1172_v60 = vadd.f32 %v2793_v52, %v1006_v55  ;;  %v1133_v36 = vpop.f32.mrb[35].mxu1  ;;  %v1310_v56 = vpop.f32.mrb[33].mxu0 }
 0x132   : > { %v1345_v40 = vadd.f32 %v1294_v44, %v1221_v10  ;;  %1185 = vst.msk [vmem:[#allocation2 + $0x40] sm:$0xff] %vm252_vm8, %v1169_v43  ;;  %v1224_v5 = vld [vmem:[#allocation2 + $0x38] sm:$0xff]  ;;  %v1170_v32 = vadd.f32 %v1133_v36, %v1004_v39  ;;  %v2811_v57 = vpop.f32.mrb[34].mxu0  ;;  %v1399_v34 = vld [vmem:[#allocation2 + $0x10] sm:$0xff] }
 0x133   : > { %1363 = vst.msk [vmem:[#allocation2 + $0x30] sm:$0xff] %vm252_vm8, %v1347_v4  ;;  %v1348_v54 = vadd.f32 %v2807_v48, %v1224_v5  ;;  %1188 = vst.msk [vmem:[#allocation2 + $0x58] sm:$0xff] %vm252_vm8, %v1172_v60  ;;  %v1222_v13 = vld [vmem:[#allocation2 + $0x28] sm:$0xff]  ;;  %v1313_v6 = vpop.f32.mrb[35].mxu0  ;;  %v1397_v0 = vld [vmem:[#allocation2] sm:$0xff] }
 0x134   : > { %1361 = vst.msk [vmem:[#allocation2 + $0x20] sm:$0xff] %vm252_vm8, %v1345_v40  ;;  %v1346_v8 = vadd.f32 %v1297_v25, %v1222_v13  ;;  %1186 = vst.msk [vmem:[#allocation2 + $0x48] sm:$0xff] %vm252_vm8, %v1170_v32  ;;  %v1400_v44 = vld [vmem:[#allocation2 + $0x18] sm:$0xff] }
 0x135   : > { %1364 = vst.msk [vmem:[#allocation2 + $0x38] sm:$0xff] %vm252_vm8, %v1348_v54  ;;  %v1398_v16 = vld [vmem:[#allocation2 + $0x8] sm:$0xff] }
 0x136   : > { %1362 = vst.msk [vmem:[#allocation2 + $0x28] sm:$0xff] %vm252_vm8, %v1346_v8  ;;  %v2796_v9 = vpop.f32.mrb[36].mxu1 }
 0x137   : > { %v1175_v3 = vadd.f32 %v2796_v9, %v1009_v12  ;;  %v1146_v14 = vpop.f32.mrb[37].mxu1 }
 0x138   : > { %v1227_v49 = vld [vmem:[#allocation2 + $0x50] sm:$0xff]  ;;  %v1173_v47 = vadd.f32 %v1146_v14, %v1007_v63  ;;  %v2797_v17 = vpop.f32.mrb[38].mxu1  ;;  %v2814_v50 = vpop.f32.mrb[36].mxu0 }
 0x139   : > { %v1351_v51 = vadd.f32 %v2810_v31, %v1227_v49  ;;  %1191 = vst.msk [vmem:[#allocation2 + $0x70] sm:$0xff] %vm252_vm8, %v1175_v3  ;;  %v1225_v28 = vld [vmem:[#allocation2 + $0x40] sm:$0xff]  ;;  %v1176_v59 = vadd.f32 %v2797_v17, %v1010_v30  ;;  %v1149_v33 = vpop.f32.mrb[39].mxu1  ;;  %v1326_v24 = vpop.f32.mrb[37].mxu0 }
 0x13a   : > { %v1349_v1 = vadd.f32 %v1310_v56, %v1225_v28  ;;  %1189 = vst.msk [vmem:[#allocation2 + $0x60] sm:$0xff] %vm252_vm8, %v1173_v47  ;;  %v1228_v27 = vld [vmem:[#allocation2 + $0x58] sm:$0xff]  ;;  %v1174_v41 = vadd.f32 %v1149_v33, %v1008_v18  ;;  %v2815_v22 = vpop.f32.mrb[38].mxu0  ;;  %v1403_v52 = vld [vmem:[#allocation2 + $0x30] sm:$0xff] }
 0x13b   : > { %1367 = vst.msk [vmem:[#allocation2 + $0x50] sm:$0xff] %vm252_vm8, %v1351_v51  ;;  %v1352_v20 = vadd.f32 %v2811_v57, %v1228_v27  ;;  %1192 = vst.msk [vmem:[#allocation2 + $0x78] sm:$0xff] %vm252_vm8, %v1176_v59  ;;  %v1226_v21 = vld [vmem:[#allocation2 + $0x48] sm:$0xff]  ;;  %v1329_v46 = vpop.f32.mrb[39].mxu0  ;;  %v1401_v10 = vld [vmem:[#allocation2 + $0x20] sm:$0xff] }
 0x13c   : > { %1365 = vst.msk [vmem:[#allocation2 + $0x40] sm:$0xff] %vm252_vm8, %v1349_v1  ;;  %v1350_v61 = vadd.f32 %v1313_v6, %v1226_v21  ;;  %1190 = vst.msk [vmem:[#allocation2 + $0x68] sm:$0xff] %vm252_vm8, %v1174_v41  ;;  %v1404_v56 = vld [vmem:[#allocation2 + $0x38] sm:$0xff] }
 0x13d   : > { %1368 = vst.msk [vmem:[#allocation2 + $0x58] sm:$0xff] %vm252_vm8, %v1352_v20  ;;  %v1402_v13 = vld [vmem:[#allocation2 + $0x28] sm:$0xff] }
 0x13e   : > { %1366 = vst.msk [vmem:[#allocation2 + $0x48] sm:$0xff] %vm252_vm8, %v1350_v61  ;;  %v2820_v26 = vpop.f32.mrb[40].mxu1 }
 0x13f   : > { %v1523_v38 = vadd.f32 %v2820_v26, %v1399_v34  ;;  %v1458_v23 = vpop.f32.mrb[41].mxu1 }
 0x140   : > { %v1231_v62 = vld [vmem:[#allocation2 + $0x70] sm:$0xff]  ;;  %v1521_v42 = vadd.f32 %v1458_v23, %v1397_v0  ;;  %v2821_v29 = vpop.f32.mrb[42].mxu1  ;;  %v2838_v37 = vpop.f32.mrb[40].mxu0 }
 0x141   : > { %v1355_v58 = vadd.f32 %v2814_v50, %v1231_v62  ;;  %v1229_v48 = vld [vmem:[#allocation2 + $0x60] sm:$0xff]  ;;  %1539 = vst.msk [vmem:[#allocation2 + $0x10] sm:$0xff] %vm252_vm8, %v1523_v38  ;;  %v1524_v15 = vadd.f32 %v2821_v29, %v1400_v44  ;;  %v1461_v25 = vpop.f32.mrb[43].mxu1  ;;  %v1723_v2 = vpop.f32.mrb[41].mxu0 }
 0x142   : > { %v1353_v45 = vadd.f32 %v1326_v24, %v1229_v48  ;;  %v1232_v53 = vld [vmem:[#allocation2 + $0x78] sm:$0xff]  ;;  %1537 = vst.msk [vmem:[#allocation2] sm:$0xff] %vm252_vm8, %v1521_v42  ;;  %v1522_v7 = vadd.f32 %v1461_v25, %v1398_v16  ;;  %v2839_v35 = vpop.f32.mrb[42].mxu0  ;;  %v1407_v17 = vld [vmem:[#allocation2 + $0x50] sm:$0xff] }
 0x143   : > { %1371 = vst.msk [vmem:[#allocation2 + $0x70] sm:$0xff] %vm252_vm8, %v1355_v58  ;;  %v1356_v19 = vadd.f32 %v2815_v22, %v1232_v53  ;;  %v1230_v11 = vld [vmem:[#allocation2 + $0x68] sm:$0xff]  ;;  %1540 = vst.msk [vmem:[#allocation2 + $0x18] sm:$0xff] %vm252_vm8, %v1524_v15  ;;  %v1726_v43 = vpop.f32.mrb[43].mxu0  ;;  %v1405_v28 = vld [vmem:[#allocation2 + $0x40] sm:$0xff] }
 0x144   : > { %1369 = vst.msk [vmem:[#allocation2 + $0x60] sm:$0xff] %vm252_vm8, %v1353_v45  ;;  %v1354_v55 = vadd.f32 %v1329_v46, %v1230_v11  ;;  %1538 = vst.msk [vmem:[#allocation2 + $0x8] sm:$0xff] %vm252_vm8, %v1522_v7  ;;  %v1408_v24 = vld [vmem:[#allocation2 + $0x58] sm:$0xff] }
 0x145   : > { %1372 = vst.msk [vmem:[#allocation2 + $0x78] sm:$0xff] %vm252_vm8, %v1356_v19  ;;  %v1406_v21 = vld [vmem:[#allocation2 + $0x48] sm:$0xff] }
 0x146   : > { %1370 = vst.msk [vmem:[#allocation2 + $0x68] sm:$0xff] %vm252_vm8, %v1354_v55  ;;  %v2824_v31 = vpop.f32.mrb[44].mxu1 }
 0x147   : > { %v1527_v4 = vadd.f32 %v2824_v31, %v1403_v52  ;;  %v1474_v60 = vpop.f32.mrb[45].mxu1 }
 0x148   : > { %v1622_v39 = vld [vmem:[#allocation2 + $0x10] sm:$0xff]  ;;  %v1525_v36 = vadd.f32 %v1474_v60, %v1401_v10  ;;  %v2825_v40 = vpop.f32.mrb[46].mxu1  ;;  %v2842_v5 = vpop.f32.mrb[44].mxu0 }
 0x149   : > { %v1788_v32 = vadd.f32 %v2838_v37, %v1622_v39  ;;  %1543 = vst.msk [vmem:[#allocation2 + $0x30] sm:$0xff] %vm252_vm8, %v1527_v4  ;;  %v1620_v57 = vld [vmem:[#allocation2] sm:$0xff]  ;;  %v1528_v54 = vadd.f32 %v2825_v40, %v1404_v56  ;;  %v1477_v6 = vpop.f32.mrb[47].mxu1  ;;  %v1739_v8 = vpop.f32.mrb[45].mxu0 }
 0x14a   : > { %v1786_v12 = vadd.f32 %v1723_v2, %v1620_v57  ;;  %1541 = vst.msk [vmem:[#allocation2 + $0x20] sm:$0xff] %vm252_vm8, %v1525_v36  ;;  %v1623_v9 = vld [vmem:[#allocation2 + $0x18] sm:$0xff]  ;;  %v1526_v3 = vadd.f32 %v1477_v6, %v1402_v13  ;;  %v2843_v63 = vpop.f32.mrb[46].mxu0  ;;  %v1411_v29 = vld [vmem:[#allocation2 + $0x70] sm:$0xff] }
 0x14b   : > { %1804 = vst.msk [vmem:[#allocation2 + $0x10] sm:$0xff] %vm252_vm8, %v1788_v32  ;;  %v1789_v14 = vadd.f32 %v2839_v35, %v1623_v9  ;;  %1544 = vst.msk [vmem:[#allocation2 + $0x38] sm:$0xff] %vm252_vm8, %v1528_v54  ;;  %v1621_v49 = vld [vmem:[#allocation2 + $0x8] sm:$0xff]  ;;  %v1742_v47 = vpop.f32.mrb[47].mxu0  ;;  %v1409_v48 = vld [vmem:[#allocation2 + $0x60] sm:$0xff] }
 0x14c   : > { %1802 = vst.msk [vmem:[#allocation2] sm:$0xff] %vm252_vm8, %v1786_v12  ;;  %v1787_v30 = vadd.f32 %v1726_v43, %v1621_v49  ;;  %1542 = vst.msk [vmem:[#allocation2 + $0x28] sm:$0xff] %vm252_vm8, %v1526_v3  ;;  %v1412_v2 = vld [vmem:[#allocation2 + $0x78] sm:$0xff] }
 0x14d   : > { %1805 = vst.msk [vmem:[#allocation2 + $0x18] sm:$0xff] %vm252_vm8, %v1789_v14  ;;  %v1410_v11 = vld [vmem:[#allocation2 + $0x68] sm:$0xff] }
 0x14e   : > { %1803 = vst.msk [vmem:[#allocation2 + $0x8] sm:$0xff] %vm252_vm8, %v1787_v30  ;;  %v2828_v50 = vpop.f32.mrb[48].mxu1 }
 0x14f   : > { %v1531_v51 = vadd.f32 %v2828_v50, %v1407_v17  ;;  %v1490_v59 = vpop.f32.mrb[49].mxu1 }
 0x150   : > { %v1626_v18 = vld [vmem:[#allocation2 + $0x30] sm:$0xff]  ;;  %v1529_v33 = vadd.f32 %v1490_v59, %v1405_v28  ;;  %v2829_v1 = vpop.f32.mrb[50].mxu1  ;;  %v2846_v27 = vpop.f32.mrb[48].mxu0 }
 0x151   : > { %v1792_v41 = vadd.f32 %v2842_v5, %v1626_v18  ;;  %1547 = vst.msk [vmem:[#allocation2 + $0x50] sm:$0xff] %vm252_vm8, %v1531_v51  ;;  %v1624_v22 = vld [vmem:[#allocation2 + $0x20] sm:$0xff]  ;;  %v1532_v20 = vadd.f32 %v2829_v1, %v1408_v24  ;;  %v1493_v46 = vpop.f32.mrb[51].mxu1  ;;  %v1755_v61 = vpop.f32.mrb[49].mxu0 }
 0x152   : > { %v1790_v34 = vadd.f32 %v1739_v8, %v1624_v22  ;;  %1545 = vst.msk [vmem:[#allocation2 + $0x40] sm:$0xff] %vm252_vm8, %v1529_v33  ;;  %v1627_v26 = vld [vmem:[#allocation2 + $0x38] sm:$0xff]  ;;  %v1530_v38 = vadd.f32 %v1493_v46, %v1406_v21  ;;  %v2847_v0 = vpop.f32.mrb[50].mxu0  ;;  %v1828_v40 = vld [vmem:[#allocation2 + $0x10] sm:$0xff] }
 0x153   : > { %1808 = vst.msk [vmem:[#allocation2 + $0x30] sm:$0xff] %vm252_vm8, %v1792_v41  ;;  %v1793_v23 = vadd.f32 %v2843_v63, %v1627_v26  ;;  %1548 = vst.msk [vmem:[#allocation2 + $0x58] sm:$0xff] %vm252_vm8, %v1532_v20  ;;  %v1625_v62 = vld [vmem:[#allocation2 + $0x28] sm:$0xff]  ;;  %v1758_v42 = vpop.f32.mrb[51].mxu0  ;;  %v1826_v57 = vld [vmem:[#allocation2] sm:$0xff] }
 0x154   : > { %1806 = vst.msk [vmem:[#allocation2 + $0x20] sm:$0xff] %vm252_vm8, %v1790_v34  ;;  %v1791_v44 = vadd.f32 %v1742_v47, %v1625_v62  ;;  %1546 = vst.msk [vmem:[#allocation2 + $0x48] sm:$0xff] %vm252_vm8, %v1530_v38  ;;  %v1829_v8 = vld [vmem:[#allocation2 + $0x18] sm:$0xff] }
 0x155   : > { %1809 = vst.msk [vmem:[#allocation2 + $0x38] sm:$0xff] %vm252_vm8, %v1793_v23  ;;  %v1827_v49 = vld [vmem:[#allocation2 + $0x8] sm:$0xff] }
 0x156   : > { %1807 = vst.msk [vmem:[#allocation2 + $0x28] sm:$0xff] %vm252_vm8, %v1791_v44  ;;  %v2832_v37 = vpop.f32.mrb[52].mxu1 }
 0x157   : > { %v1535_v58 = vadd.f32 %v2832_v37, %v1411_v29  ;;  %v1506_v15 = vpop.f32.mrb[53].mxu1 }
 0x158   : > { %v1630_v16 = vld [vmem:[#allocation2 + $0x50] sm:$0xff]  ;;  %v1533_v25 = vadd.f32 %v1506_v15, %v1409_v48  ;;  %v2833_v45 = vpop.f32.mrb[54].mxu1  ;;  %v2850_v53 = vpop.f32.mrb[52].mxu0 }
 0x159   : > { %v1796_v7 = vadd.f32 %v2846_v27, %v1630_v16  ;;  %1551 = vst.msk [vmem:[#allocation2 + $0x70] sm:$0xff] %vm252_vm8, %v1535_v58  ;;  %v1628_v35 = vld [vmem:[#allocation2 + $0x40] sm:$0xff]  ;;  %v1536_v19 = vadd.f32 %v2833_v45, %v1412_v2  ;;  %v1509_v43 = vpop.f32.mrb[55].mxu1  ;;  %v1771_v55 = vpop.f32.mrb[53].mxu0 }
 0x15a   : > { %v1794_v52 = vadd.f32 %v1755_v61, %v1628_v35  ;;  %1549 = vst.msk [vmem:[#allocation2 + $0x60] sm:$0xff] %vm252_vm8, %v1533_v25  ;;  %v1631_v31 = vld [vmem:[#allocation2 + $0x58] sm:$0xff]  ;;  %v1534_v4 = vadd.f32 %v1509_v43, %v1410_v11  ;;  %v2851_v10 = vpop.f32.mrb[54].mxu0  ;;  %v1832_v1 = vld [vmem:[#allocation2 + $0x30] sm:$0xff] }
 0x15b   : > { %1812 = vst.msk [vmem:[#allocation2 + $0x50] sm:$0xff] %vm252_vm8, %v1796_v7  ;;  %v1797_v60 = vadd.f32 %v2847_v0, %v1631_v31  ;;  %1552 = vst.msk [vmem:[#allocation2 + $0x78] sm:$0xff] %vm252_vm8, %v1536_v19  ;;  %v1629_v39 = vld [vmem:[#allocation2 + $0x48] sm:$0xff]  ;;  %v1774_v36 = vpop.f32.mrb[55].mxu0  ;;  %v1830_v22 = vld [vmem:[#allocation2 + $0x20] sm:$0xff] }
 0x15c   : > { %1810 = vst.msk [vmem:[#allocation2 + $0x40] sm:$0xff] %vm252_vm8, %v1794_v52  ;;  %v1795_v56 = vadd.f32 %v1758_v42, %v1629_v39  ;;  %1550 = vst.msk [vmem:[#allocation2 + $0x68] sm:$0xff] %vm252_vm8, %v1534_v4  ;;  %v1833_v61 = vld [vmem:[#allocation2 + $0x38] sm:$0xff] }
 0x15d   : > { %1813 = vst.msk [vmem:[#allocation2 + $0x58] sm:$0xff] %vm252_vm8, %v1797_v60  ;;  %v1831_v62 = vld [vmem:[#allocation2 + $0x28] sm:$0xff] }
 0x15e   : > { %1811 = vst.msk [vmem:[#allocation2 + $0x48] sm:$0xff] %vm252_vm8, %v1795_v56  ;;  %v2856_v5 = vpop.f32.mrb[56].mxu1 }
 0x15f   : > { %v1952_v32 = vadd.f32 %v2856_v5, %v1828_v40  ;;  %v1887_v54 = vpop.f32.mrb[57].mxu1 }
 0x160   : > { %v1634_v13 = vld [vmem:[#allocation2 + $0x70] sm:$0xff]  ;;  %v1950_v6 = vadd.f32 %v1887_v54, %v1826_v57  ;;  %v2857_v12 = vpop.f32.mrb[58].mxu1  ;;  %v2874_v9 = vpop.f32.mrb[56].mxu0 }
 0x161   : > { %v1800_v3 = vadd.f32 %v2850_v53, %v1634_v13  ;;  %v1632_v63 = vld [vmem:[#allocation2 + $0x60] sm:$0xff]  ;;  %1968 = vst.msk [vmem:[#allocation2 + $0x10] sm:$0xff] %vm252_vm8, %v1952_v32  ;;  %v1953_v14 = vadd.f32 %v2857_v12, %v1829_v8  ;;  %v1890_v47 = vpop.f32.mrb[59].mxu1  ;;  %v2051_v30 = vpop.f32.mrb[57].mxu0 }
 0x162   : > { %v1798_v17 = vadd.f32 %v1771_v55, %v1632_v63  ;;  %v1635_v50 = vld [vmem:[#allocation2 + $0x78] sm:$0xff]  ;;  %1966 = vst.msk [vmem:[#allocation2] sm:$0xff] %vm252_vm8, %v1950_v6  ;;  %v1951_v51 = vadd.f32 %v1890_v47, %v1827_v49  ;;  %v2875_v28 = vpop.f32.mrb[58].mxu0  ;;  %v1836_v45 = vld [vmem:[#allocation2 + $0x50] sm:$0xff] }
 0x163   : > { %1816 = vst.msk [vmem:[#allocation2 + $0x70] sm:$0xff] %vm252_vm8, %v1800_v3  ;;  %v1801_v59 = vadd.f32 %v2851_v10, %v1635_v50  ;;  %v1633_v18 = vld [vmem:[#allocation2 + $0x68] sm:$0xff]  ;;  %1969 = vst.msk [vmem:[#allocation2 + $0x18] sm:$0xff] %vm252_vm8, %v1953_v14  ;;  %v2054_v33 = vpop.f32.mrb[59].mxu0  ;;  %v1834_v35 = vld [vmem:[#allocation2 + $0x40] sm:$0xff] }
 0x164   : > { %1814 = vst.msk [vmem:[#allocation2 + $0x60] sm:$0xff] %vm252_vm8, %v1798_v17  ;;  %v1799_v24 = vadd.f32 %v1774_v36, %v1633_v18  ;;  %1967 = vst.msk [vmem:[#allocation2 + $0x8] sm:$0xff] %vm252_vm8, %v1951_v51  ;;  %v1837_v55 = vld [vmem:[#allocation2 + $0x58] sm:$0xff] }
 0x165   : > { %1817 = vst.msk [vmem:[#allocation2 + $0x78] sm:$0xff] %vm252_vm8, %v1801_v59  ;;  %v1835_v39 = vld [vmem:[#allocation2 + $0x48] sm:$0xff] }
 0x166   : > { %1815 = vst.msk [vmem:[#allocation2 + $0x68] sm:$0xff] %vm252_vm8, %v1799_v24  ;;  %v2860_v27 = vpop.f32.mrb[60].mxu1 }
 0x167   : > { %v1956_v41 = vadd.f32 %v2860_v27, %v1832_v1  ;;  %v1903_v20 = vpop.f32.mrb[61].mxu1 }
 0x168   : > { %v1992_v21 = vld [vmem:[#allocation2 + $0x10] sm:$0xff]  ;;  %v1954_v46 = vadd.f32 %v1903_v20, %v1830_v22  ;;  %v2861_v34 = vpop.f32.mrb[62].mxu1  ;;  %v2878_v26 = vpop.f32.mrb[60].mxu0 }
 0x169   : > { %v2116_v38 = vadd.f32 %v2874_v9, %v1992_v21  ;;  %1972 = vst.msk [vmem:[#allocation2 + $0x30] sm:$0xff] %vm252_vm8, %v1956_v41  ;;  %v1990_v0 = vld [vmem:[#allocation2] sm:$0xff]  ;;  %v1957_v23 = vadd.f32 %v2861_v34, %v1833_v61  ;;  %v1906_v42 = vpop.f32.mrb[63].mxu1  ;;  %v2067_v44 = vpop.f32.mrb[61].mxu0 }
 0x16a   : > { %v2114_v29 = vadd.f32 %v2051_v30, %v1990_v0  ;;  %1970 = vst.msk [vmem:[#allocation2 + $0x20] sm:$0xff] %vm252_vm8, %v1954_v46  ;;  %v1993_v37 = vld [vmem:[#allocation2 + $0x18] sm:$0xff]  ;;  %v1955_v58 = vadd.f32 %v1906_v42, %v1831_v62  ;;  %v2879_v48 = vpop.f32.mrb[62].mxu0  ;;  %v1840_v18 = vld [vmem:[#allocation2 + $0x70] sm:$0xff] }
 0x16b   : > { %2132 = vst.msk [vmem:[#allocation2 + $0x10] sm:$0xff] %vm252_vm8, %v2116_v38  ;;  %v2117_v15 = vadd.f32 %v2875_v28, %v1993_v37  ;;  %1973 = vst.msk [vmem:[#allocation2 + $0x38] sm:$0xff] %vm252_vm8, %v1957_v23  ;;  %v1991_v16 = vld [vmem:[#allocation2 + $0x8] sm:$0xff]  ;;  %v2070_v25 = vpop.f32.mrb[63].mxu0  ;;  %v1838_v41 = vld [vmem:[#allocation2 + $0x60] sm:$0xff] }
 0x16c   : > { %2130 = vst.msk [vmem:[#allocation2] sm:$0xff] %vm252_vm8, %v2114_v29  ;;  %v2115_v2 = vadd.f32 %v2054_v33, %v1991_v16  ;;  %1971 = vst.msk [vmem:[#allocation2 + $0x28] sm:$0xff] %vm252_vm8, %v1955_v58  ;;  %v1841_v20 = vld [vmem:[#allocation2 + $0x78] sm:$0xff] }
 0x16d   : > { %2133 = vst.msk [vmem:[#allocation2 + $0x18] sm:$0xff] %vm252_vm8, %v2117_v15  ;;  %v1839_v37 = vld [vmem:[#allocation2 + $0x68] sm:$0xff] }
 0x16e   : > { %2131 = vst.msk [vmem:[#allocation2 + $0x8] sm:$0xff] %vm252_vm8, %v2115_v2  ;;  %v2864_v53 = vpop.f32.mrb[64].mxu1 }
 0x16f   : > { %v1960_v7 = vadd.f32 %v2864_v53, %v1836_v45  ;;  %v1919_v19 = vpop.f32.mrb[65].mxu1 }
 0x170   : > { %v1996_v11 = vld [vmem:[#allocation2 + $0x30] sm:$0xff]  ;;  %v1958_v43 = vadd.f32 %v1919_v19, %v1834_v35  ;;  %v2865_v52 = vpop.f32.mrb[66].mxu1  ;;  %v2882_v31 = vpop.f32.mrb[64].mxu0 }
 0x171   : > { %v2120_v4 = vadd.f32 %v2878_v26, %v1996_v11  ;;  %1976 = vst.msk [vmem:[#allocation2 + $0x50] sm:$0xff] %vm252_vm8, %v1960_v7  ;;  %v1994_v10 = vld [vmem:[#allocation2 + $0x20] sm:$0xff]  ;;  %v1961_v60 = vadd.f32 %v2865_v52, %v1837_v55  ;;  %v1922_v36 = vpop.f32.mrb[67].mxu1  ;;  %v2083_v56 = vpop.f32.mrb[65].mxu0 }
 0x172   : > { %v2148_v40 = vld [vmem:[#allocation2 + $0x10] sm:$0xff]  ;;  %v2118_v5 = vadd.f32 %v2067_v44, %v1994_v10  ;;  %1974 = vst.msk [vmem:[#allocation2 + $0x40] sm:$0xff] %vm252_vm8, %v1958_v43  ;;  %v1997_v32 = vld [vmem:[#allocation2 + $0x38] sm:$0xff]  ;;  %v1959_v57 = vadd.f32 %v1922_v36, %v1835_v39  ;;  %v3882_v54 = vpop.f32.mrb[66].mxu0 }
 0x173   : > { %v2631_v13 = vpack.c.bf16 %v2148_v40, %v2148_v40  ;;  %v2146_v6 = vld [vmem:[#allocation2] sm:$0xff]  ;;  %2136 = vst.msk [vmem:[#allocation2 + $0x30] sm:$0xff] %vm252_vm8, %v2120_v4  ;;  %v2121_v8 = vadd.f32 %v2879_v48, %v1997_v32  ;;  %1977 = vst.msk [vmem:[#allocation2 + $0x58] sm:$0xff] %vm252_vm8, %v1961_v60  ;;  %v1995_v12 = vld [vmem:[#allocation2 + $0x28] sm:$0xff]  ;;  %v3886_v9 = vpop.f32.mrb[67].mxu0  ;;  %v2284_v47 = vmul.f32 %v2148_v40, %v2148_v40  ;;  %v2246_v21 = vsel %vm252_vm8, %v2148_v40, 0.0 }
 0x174   : > { %v2629_v3 = vpack.c.bf16 %v2146_v6, %v2146_v6  ;;  %v2282_v63 = vmul.f32 %v2146_v6, %v2146_v6  ;;  %v2149_v14 = vld [vmem:[#allocation2 + $0x18] sm:$0xff]  ;;  %2134 = vst.msk [vmem:[#allocation2 + $0x20] sm:$0xff] %vm252_vm8, %v2118_v5  ;;  %v2119_v49 = vadd.f32 %v2070_v25, %v1995_v12  ;;  %1975 = vst.msk [vmem:[#allocation2 + $0x48] sm:$0xff] %vm252_vm8, %v1959_v57  ;;  %v2243_v50 = vsel %vm252_vm8, %v2146_v6, 0.0 }
 0x175   : > { %2229 = vst.msk [vmem:[%s3879_s4 + $0x8] sm:$0xf] %vm2226_vm9, %v2631_v13  ;;  %v2632_v30 = vpack.c.bf16 %v2149_v14, %v2149_v14  ;;  %v2147_v17 = vld [vmem:[#allocation2 + $0x8] sm:$0xff]  ;;  %v2285_v24 = vmul.f32 %v2149_v14, %v2149_v14  ;;  %v2301_v15 = vsel %vm252_vm8, %v2284_v47, 0.0  ;;  %v2248_v53 = vsel %vm252_vm8, %v2149_v14, 0.0 }
 0x176   : > { %2137 = vst.msk [vmem:[#allocation2 + $0x38] sm:$0xff] %vm252_vm8, %v2121_v8  ;;  %v2630_v51 = vpack.c.bf16 %v2147_v17, %v2147_v17  ;;  %v2244_v28 = vsel %vm252_vm8, %v2147_v17, 0.0  ;;  %v2283_v59 = vmul.f32 %v2147_v17, %v2147_v17  ;;  %2135 = vst.msk [vmem:[#allocation2 + $0x28] sm:$0xff] %vm252_vm8, %v2119_v49  ;;  %v2868_v33 = vpop.f32.mrb[68].mxu1  ;;  %v2298_v46 = vsel %vm252_vm8, %v2282_v63, 0.0 }
 0x177   : > { %2227 = vst.msk [vmem:[%s3879_s4] sm:$0xf] %vm2226_vm9, %v2629_v3  ;;  %2230 = vst.msk [vmem:[%s3879_s4 + $0xc] sm:$0xf] %vm2226_vm9, %v2632_v30  ;;  %v2245_v1 = vadd.f32 %v2244_v28, %v2243_v50  ;;  %v1964_v27 = vadd.f32 %v2868_v33, %v1840_v18  ;;  %v1935_v22 = vpop.f32.mrb[69].mxu1  ;;  %v2303_v7 = vsel %vm252_vm8, %v2285_v24, 0.0 }
 0x178   : > { %2228 = vst.msk [vmem:[%s3879_s4 + $0x4] sm:$0xf] %vm2226_vm9, %v2630_v51  ;;  %v2299_v61 = vsel %vm252_vm8, %v2283_v59, 0.0  ;;  %v2000_v34 = vld [vmem:[#allocation2 + $0x50] sm:$0xff]  ;;  %v1962_v26 = vadd.f32 %v1935_v22, %v1838_v41  ;;  %v2869_v38 = vpop.f32.mrb[70].mxu1  ;;  %v2886_v0 = vpop.f32.mrb[68].mxu0 }
 0x179   : > { %v2247_v23 = vadd.f32 %v2246_v21, %v2245_v1  ;;  %v2300_v62 = vadd.f32 %v2299_v61, %v2298_v46  ;;  %v2124_v42 = vadd.f32 %v2882_v31, %v2000_v34  ;;  %1980 = vst.msk [vmem:[#allocation2 + $0x70] sm:$0xff] %vm252_vm8, %v1964_v27  ;;  %v1998_v44 = vld [vmem:[#allocation2 + $0x40] sm:$0xff]  ;;  %v1965_v29 = vadd.f32 %v2869_v38, %v1841_v20  ;;  %v1938_v58 = vpop.f32.mrb[71].mxu1  ;;  %v2099_v48 = vpop.f32.mrb[69].mxu0 }
 0x17a   : > { %v2152_v16 = vld [vmem:[#allocation2 + $0x30] sm:$0xff]  ;;  %v2122_v25 = vadd.f32 %v2083_v56, %v1998_v44  ;;  %1978 = vst.msk [vmem:[#allocation2 + $0x60] sm:$0xff] %vm252_vm8, %v1962_v26  ;;  %v1963_v2 = vadd.f32 %v1938_v58, %v1839_v37  ;;  %v2887_v45 = vpop.f32.mrb[70].mxu0  ;;  %v2001_v60 = vld [vmem:[#allocation2 + $0x58] sm:$0xff] }
 0x17b   : > { %v2302_v35 = vadd.f32 %v2301_v15, %v2300_v62  ;;  %v2635_v19 = vpack.c.bf16 %v2152_v16, %v2152_v16  ;;  %v2150_v11 = vld [vmem:[#allocation2 + $0x20] sm:$0xff]  ;;  %2140 = vst.msk [vmem:[#allocation2 + $0x50] sm:$0xff] %vm252_vm8, %v2124_v42  ;;  %1981 = vst.msk [vmem:[#allocation2 + $0x78] sm:$0xff] %vm252_vm8, %v1965_v29  ;;  %v2102_v43 = vpop.f32.mrb[71].mxu0  ;;  %v2249_v52 = vadd.f32 %v2248_v53, %v2247_v23  ;;  %v1999_v40 = vld [vmem:[#allocation2 + $0x48] sm:$0xff]  ;;  %v2254_v47 = vsel %vm252_vm8, %v2152_v16, 0.0 }
 0x17c   : > { %v2633_v55 = vpack.c.bf16 %v2150_v11, %v2150_v11  ;;  %v2250_v31 = vsel %vm252_vm8, %v2150_v11, 0.0  ;;  %v2286_v4 = vmul.f32 %v2150_v11, %v2150_v11  ;;  %2138 = vst.msk [vmem:[#allocation2 + $0x40] sm:$0xff] %vm252_vm8, %v2122_v25  ;;  %1979 = vst.msk [vmem:[#allocation2 + $0x68] sm:$0xff] %vm252_vm8, %v1963_v2  ;;  %v2288_v5 = vmul.f32 %v2152_v16, %v2152_v16 }
 0x17d   : > { %v2153_v10 = vld [vmem:[#allocation2 + $0x38] sm:$0xff]  ;;  %2233 = vst.msk [vmem:[%s3879_s4 + $0x18] sm:$0xf] %vm2226_vm9, %v2635_v19  ;;  %v2304_v39 = vadd.f32 %v2303_v7, %v2302_v35  ;;  %v2151_v56 = vld [vmem:[#allocation2 + $0x28] sm:$0xff]  ;;  %v2251_v32 = vadd.f32 %v2250_v31, %v2249_v52  ;;  %v2125_v3 = vadd.f32 %v3882_v54, %v2001_v60  ;;  %v2123_v14 = vadd.f32 %v3886_v9, %v1999_v40 }
 0x17e   : > { %v2636_v36 = vpack.c.bf16 %v2153_v10, %v2153_v10  ;;  %2231 = vst.msk [vmem:[%s3879_s4 + $0x10] sm:$0xf] %vm2226_vm9, %v2633_v55  ;;  %v2305_v57 = vsel %vm252_vm8, %v2286_v4, 0.0  ;;  %v2634_v13 = vpack.c.bf16 %v2151_v56, %v2151_v56  ;;  %v2252_v8 = vsel %vm252_vm8, %v2151_v56, 0.0 }
 0x17f   : > { %v2306_v6 = vadd.f32 %v2305_v57, %v2304_v39  ;;  %v2287_v12 = vmul.f32 %v2151_v56, %v2151_v56  ;;  %v2253_v63 = vadd.f32 %v2252_v8, %v2251_v32  ;;  %v2289_v30 = vmul.f32 %v2153_v10, %v2153_v10  ;;  %2141 = vst.msk [vmem:[#allocation2 + $0x58] sm:$0xff] %vm252_vm8, %v2125_v3 }
 0x180   : > { %2234 = vst.msk [vmem:[%s3879_s4 + $0x1c] sm:$0xf] %vm2226_vm9, %v2636_v36  ;;  %2232 = vst.msk [vmem:[%s3879_s4 + $0x14] sm:$0xf] %vm2226_vm9, %v2634_v13  ;;  %v2004_v49 = vld [vmem:[#allocation2 + $0x70] sm:$0xff]  ;;  %v2309_v9 = vsel %vm252_vm8, %v2288_v5, 0.0 }
 0x181   : > { %v2307_v17 = vsel %vm252_vm8, %v2287_v12, 0.0  ;;  %v2128_v50 = vadd.f32 %v2886_v0, %v2004_v49  ;;  %v2002_v51 = vld [vmem:[#allocation2 + $0x60] sm:$0xff]  ;;  %v2255_v28 = vadd.f32 %v2254_v47, %v2253_v63  ;;  %2139 = vst.msk [vmem:[#allocation2 + $0x48] sm:$0xff] %vm252_vm8, %v2123_v14  ;;  %v2256_v24 = vsel %vm252_vm8, %v2153_v10, 0.0 }
 0x182   : > { %v2308_v59 = vadd.f32 %v2307_v17, %v2306_v6  ;;  %v2156_v18 = vld [vmem:[#allocation2 + $0x50] sm:$0xff]  ;;  %v2126_v54 = vadd.f32 %v2099_v48, %v2002_v51  ;;  %v2005_v33 = vld [vmem:[#allocation2 + $0x78] sm:$0xff]  ;;  %v2311_v34 = vsel %vm252_vm8, %v2289_v30, 0.0 }
 0x183   : > { %v2639_v1 = vpack.c.bf16 %v2156_v18, %v2156_v18  ;;  %v2154_v27 = vld [vmem:[#allocation2 + $0x40] sm:$0xff]  ;;  %2144 = vst.msk [vmem:[#allocation2 + $0x70] sm:$0xff] %vm252_vm8, %v2128_v50  ;;  %v2129_v41 = vadd.f32 %v2887_v45, %v2005_v33  ;;  %v2003_v22 = vld [vmem:[#allocation2 + $0x68] sm:$0xff]  ;;  %v2257_v46 = vadd.f32 %v2256_v24, %v2255_v28  ;;  %v2292_v58 = vmul.f32 %v2156_v18, %v2156_v18 }
 0x184   : > { %v2310_v20 = vadd.f32 %v2309_v9, %v2308_v59  ;;  %v2637_v21 = vpack.c.bf16 %v2154_v27, %v2154_v27  ;;  %v2258_v61 = vsel %vm252_vm8, %v2154_v27, 0.0  ;;  %2142 = vst.msk [vmem:[#allocation2 + $0x60] sm:$0xff] %vm252_vm8, %v2126_v54  ;;  %v2290_v26 = vmul.f32 %v2154_v27, %v2154_v27 }
 0x185   : > { %2237 = vst.msk [vmem:[%s3879_s4 + $0x28] sm:$0xf] %vm2226_vm9, %v2639_v1  ;;  %v2127_v38 = vadd.f32 %v2102_v43, %v2003_v22  ;;  %v2259_v23 = vadd.f32 %v2258_v61, %v2257_v46  ;;  %v2262_v7 = vsel %vm252_vm8, %v2156_v18, 0.0  ;;  %v2317_v10 = vsel %vm252_vm8, %v2292_v58, 0.0 }
 0x186   : > { %2145 = vst.msk [vmem:[#allocation2 + $0x78] sm:$0xff] %vm252_vm8, %v2129_v41  ;;  %v2312_v0 = vadd.f32 %v2311_v34, %v2310_v20  ;;  %v2313_v62 = vsel %vm252_vm8, %v2290_v26, 0.0  ;;  %v2157_v42 = vld [vmem:[#allocation2 + $0x58] sm:$0xff] }
 0x187   : > { %2235 = vst.msk [vmem:[%s3879_s4 + $0x20] sm:$0xf] %vm2226_vm9, %v2637_v21  ;;  %v2640_v29 = vpack.c.bf16 %v2157_v42, %v2157_v42  ;;  %v2293_v35 = vmul.f32 %v2157_v42, %v2157_v42  ;;  %v2264_v60 = vsel %vm252_vm8, %v2157_v42, 0.0 }
 0x188   : > { %2143 = vst.msk [vmem:[#allocation2 + $0x68] sm:$0xff] %vm252_vm8, %v2127_v38  ;;  %v2314_v44 = vadd.f32 %v2313_v62, %v2312_v0  ;;  %v2155_v37 = vld [vmem:[#allocation2 + $0x48] sm:$0xff] }
 0x189   : > { %v2638_v48 = vpack.c.bf16 %v2155_v37, %v2155_v37  ;;  %v2260_v15 = vsel %vm252_vm8, %v2155_v37, 0.0  ;;  %v2291_v16 = vmul.f32 %v2155_v37, %v2155_v37  ;;  %2238 = vst.msk [vmem:[%s3879_s4 + $0x2c] sm:$0xf] %vm2226_vm9, %v2640_v29  ;;  %v2319_v32 = vsel %vm252_vm8, %v2293_v35, 0.0 }
 0x18a   : > { %v2160_v25 = vld [vmem:[#allocation2 + $0x70] sm:$0xff]  ;;  %v2261_v2 = vadd.f32 %v2260_v15, %v2259_v23 }
 0x18b   : > { %v2643_v45 = vpack.c.bf16 %v2160_v25, %v2160_v25  ;;  %v2158_v53 = vld [vmem:[#allocation2 + $0x60] sm:$0xff]  ;;  %2236 = vst.msk [vmem:[%s3879_s4 + $0x24] sm:$0xf] %vm2226_vm9, %v2638_v48  ;;  %v2315_v19 = vsel %vm252_vm8, %v2291_v16, 0.0  ;;  %v2296_v3 = vmul.f32 %v2160_v25, %v2160_v25  ;;  %v2270_v47 = vsel %vm252_vm8, %v2160_v25, 0.0 }
 0x18c   : > { %v2641_v11 = vpack.c.bf16 %v2158_v53, %v2158_v53  ;;  %v2263_v55 = vadd.f32 %v2262_v7, %v2261_v2  ;;  %v2316_v52 = vadd.f32 %v2315_v19, %v2314_v44  ;;  %v2294_v31 = vmul.f32 %v2158_v53, %v2158_v53 }
 0x18d   : > { %v2161_v43 = vld [vmem:[#allocation2 + $0x78] sm:$0xff]  ;;  %2241 = vst.msk [vmem:[%s3879_s4 + $0x38] sm:$0xf] %vm2226_vm9, %v2643_v45  ;;  %v2266_v39 = vsel %vm252_vm8, %v2158_v53, 0.0  ;;  %v2325_v51 = vsel %vm252_vm8, %v2296_v3, 0.0 }
 0x18e   : > { %v2644_v4 = vpack.c.bf16 %v2161_v43, %v2161_v43  ;;  %2239 = vst.msk [vmem:[%s3879_s4 + $0x30] sm:$0xf] %vm2226_vm9, %v2641_v11  ;;  %v2318_v56 = vadd.f32 %v2317_v10, %v2316_v52  ;;  %v2265_v40 = vadd.f32 %v2264_v60, %v2263_v55  ;;  %v2321_v57 = vsel %vm252_vm8, %v2294_v31, 0.0 }
 0x18f   : > { %v2159_v36 = vld [vmem:[#allocation2 + $0x68] sm:$0xff]  ;;  %v2297_v30 = vmul.f32 %v2161_v43, %v2161_v43  ;;  %v2272_v28 = vsel %vm252_vm8, %v2161_v43, 0.0 }
 0x190   : > { %2242 = vst.msk [vmem:[%s3879_s4 + $0x3c] sm:$0xf] %vm2226_vm9, %v2644_v4  ;;  %v2642_v5 = vpack.c.bf16 %v2159_v36, %v2159_v36  ;;  %v2268_v13 = vsel %vm252_vm8, %v2159_v36, 0.0  ;;  %v2295_v6 = vmul.f32 %v2159_v36, %v2159_v36  ;;  %v2267_v8 = vadd.f32 %v2266_v39, %v2265_v40 }
 0x191   : > { %v2320_v12 = vadd.f32 %v2319_v32, %v2318_v56  ;;  %v2327_v54 = vsel %vm252_vm8, %v2297_v30, 0.0 }
 0x192   : > { %2240 = vst.msk [vmem:[%s3879_s4 + $0x34] sm:$0xf] %vm2226_vm9, %v2642_v5  ;;  %v2323_v63 = vsel %vm252_vm8, %v2295_v6, 0.0  ;;  %v2269_v49 = vadd.f32 %v2268_v13, %v2267_v8 }
 0x193   : > { %v2322_v14 = vadd.f32 %v2321_v57, %v2320_v12 }
 0x194   : > { %v2271_v17 = vadd.f32 %v2270_v47, %v2269_v49 }
 0x195   : > { %v2324_v50 = vadd.f32 %v2323_v63, %v2322_v14 }
 0x196   : > { %v2273_v59 = vadd.f32 %v2272_v28, %v2271_v17 }
 0x197   : > { %v2326_v18 = vadd.f32 %v2325_v51, %v2324_v50 }
 0x198   : > { %v2274_v33 = vrot.slane %v2273_v59, 4 }
 0x199   : > { %v2328_v9 = vadd.f32 %v2327_v54, %v2326_v18 }
 0x19a   : > { %v2275_v24 = vadd.f32 %v2274_v33, %v2273_v59 }
 0x19b   : > { %v2329_v1 = vrot.slane %v2328_v9, 4 }
 0x19c   : > { %v2276_v27 = vrot.slane %v2275_v24, 2 }
 0x19d   : > { %v2330_v41 = vadd.f32 %v2329_v1, %v2328_v9 }
 0x19e   : > { %v2277_v22 = vadd.f32 %v2276_v27, %v2275_v24 }
 0x19f   : > { %v2331_v20 = vrot.slane %v2330_v41, 2 }
 0x1a0   : > { %v2278_v21 = vrot.slane %v2277_v22, 1 }
 0x1a1   : > { %v2332_v46 = vadd.f32 %v2331_v20, %v2330_v41 }
 0x1a2   : > { %v2279_v61 = vadd.f32 %v2278_v21, %v2277_v22 }
 0x1a3   : > { %v2333_v34 = vrot.slane %v2332_v46, 1 }
 0x1a4   : > { %2281 = vst.msk [vmem:[%s216_s10] sm:$0x1] %vm2280_vm10, %v2279_v61 }
 0x1a5   : > { %v2334_v26 = vadd.f32 %v2333_v34, %v2332_v46 }
 0x1a7   : > { %2335 = vst.msk [vmem:[%s216_s10 + $0x1] sm:$0x1] %vm2280_vm10, %v2334_v26 }
 0x1a8 PF: > { %s14_s16 = sadd.s32 1, %s2990_s16   ;;  %s4019_s12 = smov %s2982_s14 }
 0x1a9   : > { %p11_p8 = scmp.ge.s32.totalorder %s14_s16, 6   ;;  %s4020_s13 = smov %s2986_s15 }
 0x1aa   : > { %s4021_s14 = smov %s4024_s17  ;;  %s4022_s15 = smov %s4028_s18 }
 0x1ab   :  { %13 = sbr.rel (!%p11_p8) target bundleno = 3 (0x3), region = 79 }

</bundles_post_ra>
